<compile_context>
chip_gen: v6e
topology: v6e:2x2x1
jax: 0.10.0
libtpu: 0.0.40
codegen_flags: <defaults>
</compile_context>

<pallas_src>
import math
from functools import partial

import jax
import jax.numpy as jnp
from jax.experimental import pallas as pl
from jax.experimental.pallas import tpu as pltpu

# MXU operand dtype: bf16 is native full-rate on v5e/v6e/v7x MXU (no int8 on
# v7x).  Accumulation is f32 (preferred_element_type); elementwise stays f32.
_MXU_DTYPE = jnp.bfloat16

# Scoped-VMEM cap: above the 16-32 MiB defaults, under v7x's 64 MiB physical
# per TensorCore (can go ~96 MiB on v5e/v6e at production tiles).
_VMEM_LIMIT = 48 * 1024 * 1024


# ----------------------------- helpers (in-kernel) -------------------------- #

def _ln(x, g, b, eps=1e-5):
    mu = jnp.mean(x, axis=-1, keepdims=True)
    var = jnp.mean((x - mu) ** 2, axis=-1, keepdims=True)
    return (x - mu) * jax.lax.rsqrt(var + eps) * g + b


def _mm(a, b):
    return jnp.dot(a.astype(_MXU_DTYPE), b.astype(_MXU_DTYPE),
                   preferred_element_type=jnp.float32)


# ------------------------- fused transformer layer(s) ----------------------- #

def _transformer_kernel(q_ref, v_ref, *refs, n_heads, apply_pos):
    if apply_pos:
        (wk_ref, bk_ref, wv_ref, bv_ref, wo_ref, bo_ref, g1_ref, c1_ref,
         w1_ref, b1_ref, w2_ref, b2_ref, g2_ref, c2_ref, o_ref) = refs
    else:
        (wk_ref, bk_ref, wv_ref, bv_ref, wo_ref, bo_ref, g1_ref, c1_ref,
         o_ref) = refs

    x = q_ref[0, 0].astype(jnp.float32)        # (L, D), query == key (module contract)
    vals = v_ref[0, 0].astype(jnp.float32)     # (L, D)
    L, D = x.shape
    dk = D // n_heads
    scale = 1.0 / math.sqrt(dk)

    # Two separate projections (no wasted cross terms); kq_same => shared QK proj.
    qk = _mm(x, wk_ref[0]) + bk_ref[0]         # (L, D)
    v = _mm(vals, wv_ref[0]) + bv_ref[0]       # (L, D)

    # Heads via one reshape + swapaxes (no per-head lane slices / stacks).
    kh = qk.reshape(L, n_heads, dk).swapaxes(0, 1)      # (H, L, dk)
    vh = v.reshape(L, n_heads, dk).swapaxes(0, 1)       # (H, L, dk)
    qh = kh * scale                                      # fold 1/sqrt(dk) into Q

    s = jnp.einsum('hqd,hkd->hqk', qh.astype(_MXU_DTYPE), kh.astype(_MXU_DTYPE),
                   preferred_element_type=jnp.float32)   # (H, L, L) f32
    row = jax.lax.broadcasted_iota(jnp.int32, (L, L), 0)
    col = jax.lax.broadcasted_iota(jnp.int32, (L, L), 1)
    # mask=1 in the PyTorch TransformerLayer -> causal, diagonal visible.
    # Mask added on f32 scores, so -1e30 is safe even with bf16 MXU operands.
    s = s + jnp.where(col <= row, 0.0, -1e30)[None, :, :]
    m = jnp.max(s, axis=-1, keepdims=True)
    p = jnp.exp(s - m)
    p = p * pl.reciprocal(jnp.sum(p, axis=-1, keepdims=True), approx=True)
    ctx = jnp.einsum('hqk,hkd->hqd', p.astype(_MXU_DTYPE), vh.astype(_MXU_DTYPE),
                     preferred_element_type=jnp.float32)  # (H, L, dk)
    ctx = ctx.swapaxes(0, 1).reshape(L, D)

    attn_out = _mm(ctx, wo_ref[0]) + bo_ref[0]
    x1 = _ln(x + attn_out, g1_ref[0], c1_ref[0])

    if apply_pos:  # position-wise FFN + second LayerNorm, resident in VMEM
        h = jnp.maximum(_mm(x1, w1_ref[0]) + b1_ref[0], 0.0)
        x1 = _ln(x1 + _mm(h, w2_ref[0]) + b2_ref[0], g2_ref[0], c2_ref[0])

    o_ref[0, 0] = x1.astype(o_ref.dtype)


def stack_layer_params(layer_list):
    """Stack per-layer param dicts along a leading P axis.

    1-D params become (P, 1, d) so their BlockSpec last-two dims are
    tile-friendly (second-to-last block dim == full dim 1)."""
    out = {}
    for name in layer_list[0]:
        arr = jnp.stack([lp[name] for lp in layer_list], axis=0)
        if arr.ndim == 2:
            arr = arr[:, None, :]
        out[name] = arr
    return out


def transformer_layers(tps, n_heads, query, values, apply_pos):
    """Run P AKT-style layers (kq_same=True, query==key) in ONE pallas_call.

    tps: dict of stacked params (leading axis P).
    query/values: (P, B, L, D).  Returns (P, B, L, D) float32."""
    P, B, L, D = query.shape
    names = ["wk", "bk", "wv", "bv", "wo", "bo", "ln1_g", "ln1_b"]
    if apply_pos:
        names += ["w1", "b1", "w2", "b2", "ln2_g", "ln2_b"]
    _MAT = {"wk", "wv", "wo", "w1", "w2"}            # matmul weights -> bf16 in HBM
    weights = [tps[n].astype(_MXU_DTYPE) if n in _MAT else tps[n] for n in names]

    seq_spec = pl.BlockSpec((1, 1, L, D), lambda p, b: (p, b, 0, 0))

    def per_layer_spec(arr):
        nd = arr.ndim
        return pl.BlockSpec((1,) + arr.shape[1:],
                            lambda p, b: (p,) + (0,) * (nd - 1))

    return pl.pallas_call(
        partial(_transformer_kernel, n_heads=n_heads, apply_pos=apply_pos),
        out_shape=jax.ShapeDtypeStruct((P, B, L, D), jnp.float32),
        grid=(P, B),
        in_specs=[seq_spec, seq_spec] + [per_layer_spec(w) for w in weights],
        out_specs=seq_spec,
        compiler_params=pltpu.CompilerParams(
            dimension_semantics=("parallel", "parallel"),
            vmem_limit_bytes=_VMEM_LIMIT),
    )(query, values, *weights)


# ------------------------- fused TCN residual block ------------------------- #

def _tcn_block_kernel(x_ref, w1_ref, b1_ref, w2_ref, b2_ref, *rest,
                      ks, dil, has_down):
    if has_down:
        wd_ref, bd_ref, o_ref = rest
    else:
        (o_ref,) = rest
    x = x_ref[0].astype(jnp.float32)                 # (L, Cin)
    L = x.shape[0]
    pad = (ks - 1) * dil

    def causal_conv(arr, w_ref, b_ref):
        # Tap-accumulated dilated causal conv: ks small matmuls into one f32
        # accumulator (1x VMEM residency, same MXU FLOPs as im2col).
        cin = arr.shape[-1]
        cout = w_ref.shape[-1]
        if pad > 0:
            arr = jnp.concatenate(
                [jnp.zeros((pad, cin), jnp.float32), arr], axis=0)
        acc = jnp.zeros((L, cout), jnp.float32) + b_ref[...]
        for t in range(ks):                          # static unrolled taps
            acc = acc + _mm(arr[t * dil:t * dil + L, :], w_ref[t])
        return acc

    y = jnp.maximum(causal_conv(x, w1_ref, b1_ref), 0.0)
    z = jnp.maximum(causal_conv(y, w2_ref, b2_ref), 0.0)
    if has_down:
        res = _mm(x, wd_ref[...]) + bd_ref[...]
    else:
        res = x
    o_ref[0] = jnp.maximum(z + res, 0.0).astype(o_ref.dtype)


def tcn_block(x, blk, ks, dil):
    """One fused dilated-causal residual block. x: (B, L, Cin) -> (B, L, Cout)."""
    B, L, Cin = x.shape
    Cout = blk["w1"].shape[-1]
    has_down = "wd" in blk

    def const_spec(arr):
        nd = arr.ndim
        return pl.BlockSpec(arr.shape, lambda b: (0,) * nd)

    winputs = [blk["w1"].astype(_MXU_DTYPE), blk["b1"].reshape(1, Cout),
               blk["w2"].astype(_MXU_DTYPE), blk["b2"].reshape(1, Cout)]
    if has_down:
        winputs += [blk["wd"].astype(_MXU_DTYPE), blk["bd"].reshape(1, Cout)]

    return pl.pallas_call(
        partial(_tcn_block_kernel, ks=ks, dil=dil, has_down=has_down),
        out_shape=jax.ShapeDtypeStruct((B, L, Cout), jnp.float32),
        grid=(B,),
        in_specs=[pl.BlockSpec((1, L, Cin), lambda b: (b, 0, 0))]
                 + [const_spec(a) for a in winputs],
        out_specs=pl.BlockSpec((1, L, Cout), lambda b: (b, 0, 0)),
        compiler_params=pltpu.CompilerParams(
            dimension_semantics=("parallel",),
            vmem_limit_bytes=_VMEM_LIMIT),
    )(x, *winputs)


def tcn_v4(blocks, x, ks):
    """Stacked dilated causal TCN blocks; returns per-level outputs (a list)."""
    outs = []
    h = x
    for j, blk in enumerate(blocks):
        h = tcn_block(h, blk, ks, 2 ** j)
        outs.append(h)
    return outs


# ---------------------- fused position-wise feed-forward -------------------- #

def _ffn_kernel(x_ref, w1_ref, b1_ref, w2_ref, b2_ref, o_ref, *, sigmoid):
    h = jnp.maximum(_mm(x_ref[...], w1_ref[...]) + b1_ref[...], 0.0)
    y = _mm(h, w2_ref[...]) + b2_ref[...]
    if sigmoid:                      # fused epilogue
        y = jax.nn.sigmoid(y)
    o_ref[...] = y.astype(o_ref.dtype)


def fused_ffn(x, w1, b1, w2, b2, sigmoid=False, lane_pad_out=False):
    """relu(x @ w1 + b1) @ w2 + b2 (+ optional sigmoid), one pallas_call.

    M-tiled with cdiv + zero-padded tail (no whole-M fallback).  With
    lane_pad_out, the output dim is padded up to a multiple of 128 so the
    stores are lane-dense (unmasked vst); padding is sliced off in JAX."""
    *lead, K = x.shape
    x2 = x.reshape(-1, K).astype(jnp.float32)
    M = x2.shape[0]
    hid = w1.shape[1]
    N = w2.shape[1]

    Np = N
    if lane_pad_out and N % 128 != 0:
        Np = ((N + 127) // 128) * 128
        w2 = jnp.pad(w2, ((0, 0), (0, Np - N)))
        b2 = jnp.pad(b2, (0, Np - N))

    tm = 512 if M >= 512 else ((M + 7) // 8) * 8      # multiple of 8 sublanes
    Mp = ((M + tm - 1) // tm) * tm
    if Mp != M:
        x2 = jnp.pad(x2, ((0, Mp - M), (0, 0)))

    out = pl.pallas_call(
        partial(_ffn_kernel, sigmoid=sigmoid),
        out_shape=jax.ShapeDtypeStruct((Mp, Np), jnp.float32),
        grid=(Mp // tm,),
        in_specs=[
            pl.BlockSpec((tm, K), lambda i: (i, 0)),
            pl.BlockSpec((K, hid), lambda i: (0, 0)),
            pl.BlockSpec((1, hid), lambda i: (0, 0)),
            pl.BlockSpec((hid, Np), lambda i: (0, 0)),
            pl.BlockSpec((1, Np), lambda i: (0, 0)),
        ],
        out_specs=pl.BlockSpec((tm, Np), lambda i: (i, 0)),
        compiler_params=pltpu.CompilerParams(
            dimension_semantics=("parallel",),
            vmem_limit_bytes=_VMEM_LIMIT),
    )(x2, w1.astype(_MXU_DTYPE), b1.reshape(1, hid),
      w2.astype(_MXU_DTYPE), b2.reshape(1, Np))
    return out[:M, :N].reshape(*lead, N)


# ------------------------------- JAX glue ----------------------------------- #

def ss_attention(sp, x):
    """SE over the path axis. x: (B, P, L, C).  The PyTorch permutes to
    (B,P,C,L) and back are dropped: the squeeze is a mean over the last two
    axes and the scale is per (B, P), so they are a mathematical no-op."""
    y = jnp.mean(x, axis=(2, 3))                              # (B, P)
    y = jnp.maximum(y @ sp["w1"] + sp["b1"], 0.0)
    y = jax.nn.sigmoid(y @ sp["w2"] + sp["b2"])
    return x * y[:, :, None, None]


def context_encoder(ep, x, y, cfg):
    x_embed = jnp.take(ep["q_embed"], x, axis=0)              # (B, L, D)
    y_embed = jnp.take(ep["a_embed"], y, axis=0)
    qa = x + cfg["q_num"] * y
    qa_embed = jnp.take(ep["qa_embed"], qa, axis=0)
    # problem ids `p` are None -> difficulty branch skipped (matches module).

    # Both encoder layers (x-encoder and y-encoder) batched into ONE
    # pallas_call with grid (2, B): x layer (q=k=v=x_embed), y layer
    # (q=k=qa_embed, v=y_embed); apply_pos=False for both.
    queries = jnp.stack([x_embed, qa_embed], axis=0)          # (2, B, L, D)
    values = jnp.stack([x_embed, y_embed], axis=0)            # (2, B, L, D)
    tps = stack_layer_params([ep["tx"], ep["ty"]])
    outs = transformer_layers(tps, cfg["n_heads"], queries, values,
                              apply_pos=False)
    cat = jnp.concatenate([outs[0], outs[1]], axis=-1)        # (B, L, 2*eo)
    pr = ep["proj"]
    return fused_ffn(cat, pr["w1"], pr["b1"], pr["w2"], pr["b2"])


def lskt_forward(params, x, y, cfg):
    enc = context_encoder(params["encoder"], x, y, cfg)       # (B, L, eo)
    out_tcns = []
    for i in range(cfg["N"]):
        out_tcns.extend(
            tcn_v4(params["tcns"][i], enc, cfg["kernel_size"] * 2 ** i))
    out_stack = jnp.stack(out_tcns, axis=1)                   # (B, P, L, C)
    out = ss_attention(params["se"], out_stack)
    out = jnp.sum(out, axis=1)                                # (B, L, C)
    ffc = params["ffc"]
    return fused_ffn(out, ffc["w1"], ffc["b1"], ffc["w2"], ffc["b2"],
                     sigmoid=True, lane_pad_out=True)         # (B, L, q_num)


# ------------------------------ Param init ----------------------------------- #

def _dense(key, fan_in, fan_out):
    return jax.random.normal(key, (fan_in, fan_out), jnp.float32) * 0.05


def init_transformer(key, d_model, d_ff):
    ks = jax.random.split(key, 5)
    return dict(
        wk=_dense(ks[0], d_model, d_model), bk=jnp.zeros((d_model,), jnp.float32),
        wv=_dense(ks[1], d_model, d_model), bv=jnp.zeros((d_model,), jnp.float32),
        wo=_dense(ks[2], d_model, d_model), bo=jnp.zeros((d_model,), jnp.float32),
        ln1_g=jnp.ones((d_model,), jnp.float32), ln1_b=jnp.zeros((d_model,), jnp.float32),
        w1=_dense(ks[3], d_model, d_ff), b1=jnp.zeros((d_ff,), jnp.float32),
        w2=_dense(ks[4], d_ff, d_model), b2=jnp.zeros((d_model,), jnp.float32),
        ln2_g=jnp.ones((d_model,), jnp.float32), ln2_b=jnp.zeros((d_model,), jnp.float32),
    )


def init_tcn(key, in_ch, num_channels, ks):
    """Tap-major (ks, Cin, Cout) conv weights.
    NOTE: PyTorch Conv1d stores (Cout, Cin, ks); import with w.permute(2, 1, 0)."""
    blocks = []
    keys = jax.random.split(key, len(num_channels))
    cin = in_ch
    for j, cout in enumerate(num_channels):
        k1, k2, k3 = jax.random.split(keys[j], 3)
        blk = dict(
            w1=jax.random.normal(k1, (ks, cin, cout), jnp.float32) * 0.05,
            b1=jnp.zeros((cout,), jnp.float32),
            w2=jax.random.normal(k2, (ks, cout, cout), jnp.float32) * 0.05,
            b2=jnp.zeros((cout,), jnp.float32),
        )
        if cin != cout:
            blk["wd"] = jax.random.normal(k3, (cin, cout), jnp.float32) * 0.05
            blk["bd"] = jnp.zeros((cout,), jnp.float32)
        blocks.append(blk)
        cin = cout
    return blocks


def init_lskt(key, cfg):
    d = cfg["d_model"]
    eo = cfg["encoder_out"]
    out_size = cfg["num_channels"][-1]
    P = cfg["N"] * len(cfg["num_channels"])
    ks = jax.random.split(key, 16)
    encoder = dict(
        q_embed=jax.random.normal(ks[0], (cfg["q_num"], d), jnp.float32) * 0.05,
        a_embed=jax.random.normal(ks[1], (2, d), jnp.float32) * 0.05,
        qa_embed=jax.random.normal(ks[2], (2 * cfg["q_num"], d), jnp.float32) * 0.05,
        tx=init_transformer(ks[3], d, cfg["d_ff"]),
        ty=init_transformer(ks[4], d, cfg["d_ff"]),
        proj=dict(w1=_dense(ks[5], 2 * eo, eo), b1=jnp.zeros((eo,), jnp.float32),
                  w2=_dense(ks[6], eo, eo), b2=jnp.zeros((eo,), jnp.float32)),
    )
    tcns = [init_tcn(ks[7 + i], eo, cfg["num_channels"], cfg["kernel_size"] * 2 ** i)
            for i in range(cfg["N"])]
    hidden = max(P // cfg["N"], 1)
    se = dict(w1=_dense(ks[12], P, hidden), b1=jnp.zeros((hidden,), jnp.float32),
              w2=_dense(ks[13], hidden, P), b2=jnp.zeros((P,), jnp.float32))
    ffc = dict(w1=_dense(ks[14], out_size, cfg["ffn_h_num"]),
               b1=jnp.zeros((cfg["ffn_h_num"],), jnp.float32),
               w2=_dense(ks[15], cfg["ffn_h_num"], cfg["q_num"]),
               b2=jnp.zeros((cfg["q_num"],), jnp.float32))
    return dict(encoder=encoder, tcns=tcns, se=se, ffc=ffc)


# --------------------------------- main -------------------------------------- #

if __name__ == "__main__":
    cfg = dict(
        q_num=10,           # number of questions
        d_model=32,         # embedding size
        encoder_out=32,     # encoder output dim (== d_model, as the module requires)
        num_channels=(32, 32),
        kernel_size=2,
        N=1,                # n
        d_ff=64,
        n_heads=4,
        ffn_h_num=16,
    )
    B, L = 2, 8

    key = jax.random.PRNGKey(0)
    kp, kx, ky = jax.random.split(key, 3)
    params = init_lskt(kp, cfg)
    x = jax.random.randint(kx, (B, L), 0, cfg["q_num"], dtype=jnp.int32)
    y = jax.random.randint(ky, (B, L), 0, 2, dtype=jnp.int32)

    fwd = jax.jit(partial(lskt_forward, cfg=cfg))
    out = jax.block_until_ready(fwd(params, x, y))
    assert out.shape == (B, L, cfg["q_num"]), out.shape
    assert bool(jnp.all(jnp.isfinite(out)))
    print("KERNEL_OK")
</pallas_src>

<mosaic_0001>
module attributes {stable_mosaic.version = 11 : i64} {
  func.func @_tcn_block_kernel(%arg0: i32, %arg1: memref<1x8x32xf32, #tpu.memory_space<vmem>>, %arg2: memref<2x32x32xbf16, #tpu.memory_space<vmem>>, %arg3: memref<1x32xf32, #tpu.memory_space<vmem>>, %arg4: memref<2x32x32xbf16, #tpu.memory_space<vmem>>, %arg5: memref<1x32xf32, #tpu.memory_space<vmem>>, %arg6: memref<1x8x32xf32, #tpu.memory_space<vmem>>) attributes {dimension_semantics = [#tpu.dimension_semantics<parallel>], iteration_bounds = array<i64: 2>, scalar_prefetch = 0 : i64, scratch_operands = 0 : i64, tpu.core_type = #tpu.core_type<tc>, window_params = [{transform_indices = @transform_0, window_bounds = array<i64: 1, 8, 32>}, {pipeline_mode = #tpu.pipeline_mode<synchronous>, transform_indices = @transform_1, window_bounds = array<i64: 2, 32, 32>}, {pipeline_mode = #tpu.pipeline_mode<synchronous>, transform_indices = @transform_2, window_bounds = array<i64: 1, 32>}, {pipeline_mode = #tpu.pipeline_mode<synchronous>, transform_indices = @transform_3, window_bounds = array<i64: 2, 32, 32>}, {pipeline_mode = #tpu.pipeline_mode<synchronous>, transform_indices = @transform_4, window_bounds = array<i64: 1, 32>}, {transform_indices = @transform_5, window_bounds = array<i64: 1, 8, 32>}]} {
    %c0 = arith.constant 0 : index
    %c0_0 = arith.constant 0 : index
    %c0_1 = arith.constant 0 : index
    %0 = vector.load %arg1[%c0, %c0_0, %c0_1] : memref<1x8x32xf32, #tpu.memory_space<vmem>>, vector<1x8x32xf32>
    %1 = vector.shape_cast %0 : vector<1x8x32xf32> to vector<8x32xf32>
    %cst = arith.constant 0.000000e+00 : f32
    %2 = vector.broadcast %cst : f32 to vector<1x32xf32>
    %3 = tpu.concatenate %2, %1 in 0 : vector<1x32xf32>, vector<8x32xf32> -> vector<9x32xf32>
    %cst_2 = arith.constant 0.000000e+00 : f32
    %4 = vector.broadcast %cst_2 : f32 to vector<8x32xf32>
    %c0_3 = arith.constant 0 : index
    %c0_4 = arith.constant 0 : index
    %5 = vector.load %arg3[%c0_3, %c0_4] : memref<1x32xf32, #tpu.memory_space<vmem>>, vector<1x32xf32>
    %6 = vector.broadcast %5 : vector<1x32xf32> to vector<8x32xf32>
    %7 = arith.addf %4, %6 : vector<8x32xf32>
    %8 = vector.extract_strided_slice %3 {offsets = [0, 0], sizes = [8, 32], strides = [1, 1]} : vector<9x32xf32> to vector<8x32xf32>
    %c0_5 = arith.constant 0 : index
    %c0_6 = arith.constant 0 : index
    %c0_7 = arith.constant 0 : index
    %9 = vector.load %arg2[%c0_5, %c0_6, %c0_7] : memref<2x32x32xbf16, #tpu.memory_space<vmem>>, vector<1x32x32xbf16>
    %10 = vector.shape_cast %9 : vector<1x32x32xbf16> to vector<32x32xbf16>
    %11 = arith.truncf %8 : vector<8x32xf32> to vector<8x32xbf16>
    %cst_8 = arith.constant dense<0.000000e+00> : vector<8x32xf32>
    %12 = tpu.matmul %11, %10, %cst_8 {dimension_numbers = #tpu.dot_dimension_numbers<[1], [0], [0], [1], [0, 0, 1, 1], [], []>} : vector<8x32xbf16>, vector<32x32xbf16>, vector<8x32xf32> -> vector<8x32xf32>
    %13 = arith.addf %7, %12 : vector<8x32xf32>
    %14 = vector.extract_strided_slice %3 {offsets = [1, 0], sizes = [8, 32], strides = [1, 1]} : vector<9x32xf32> to vector<8x32xf32>
    %c1 = arith.constant 1 : index
    %c0_9 = arith.constant 0 : index
    %c0_10 = arith.constant 0 : index
    %15 = vector.load %arg2[%c1, %c0_9, %c0_10] : memref<2x32x32xbf16, #tpu.memory_space<vmem>>, vector<1x32x32xbf16>
    %16 = vector.shape_cast %15 : vector<1x32x32xbf16> to vector<32x32xbf16>
    %17 = arith.truncf %14 : vector<8x32xf32> to vector<8x32xbf16>
    %cst_11 = arith.constant dense<0.000000e+00> : vector<8x32xf32>
    %18 = tpu.matmul %17, %16, %cst_11 {dimension_numbers = #tpu.dot_dimension_numbers<[1], [0], [0], [1], [0, 0, 1, 1], [], []>} : vector<8x32xbf16>, vector<32x32xbf16>, vector<8x32xf32> -> vector<8x32xf32>
    %19 = arith.addf %13, %18 : vector<8x32xf32>
    %cst_12 = arith.constant 0.000000e+00 : f32
    %20 = vector.broadcast %cst_12 : f32 to vector<8x32xf32>
    %21 = arith.maximumf %19, %20 : vector<8x32xf32>
    %cst_13 = arith.constant 0.000000e+00 : f32
    %22 = vector.broadcast %cst_13 : f32 to vector<1x32xf32>
    %23 = tpu.concatenate %22, %21 in 0 : vector<1x32xf32>, vector<8x32xf32> -> vector<9x32xf32>
    %cst_14 = arith.constant 0.000000e+00 : f32
    %24 = vector.broadcast %cst_14 : f32 to vector<8x32xf32>
    %c0_15 = arith.constant 0 : index
    %c0_16 = arith.constant 0 : index
    %25 = vector.load %arg5[%c0_15, %c0_16] : memref<1x32xf32, #tpu.memory_space<vmem>>, vector<1x32xf32>
    %26 = vector.broadcast %25 : vector<1x32xf32> to vector<8x32xf32>
    %27 = arith.addf %24, %26 : vector<8x32xf32>
    %28 = vector.extract_strided_slice %23 {offsets = [0, 0], sizes = [8, 32], strides = [1, 1]} : vector<9x32xf32> to vector<8x32xf32>
    %c0_17 = arith.constant 0 : index
    %c0_18 = arith.constant 0 : index
    %c0_19 = arith.constant 0 : index
    %29 = vector.load %arg4[%c0_17, %c0_18, %c0_19] : memref<2x32x32xbf16, #tpu.memory_space<vmem>>, vector<1x32x32xbf16>
    %30 = vector.shape_cast %29 : vector<1x32x32xbf16> to vector<32x32xbf16>
    %31 = arith.truncf %28 : vector<8x32xf32> to vector<8x32xbf16>
    %cst_20 = arith.constant dense<0.000000e+00> : vector<8x32xf32>
    %32 = tpu.matmul %31, %30, %cst_20 {dimension_numbers = #tpu.dot_dimension_numbers<[1], [0], [0], [1], [0, 0, 1, 1], [], []>} : vector<8x32xbf16>, vector<32x32xbf16>, vector<8x32xf32> -> vector<8x32xf32>
    %33 = arith.addf %27, %32 : vector<8x32xf32>
    %34 = vector.extract_strided_slice %23 {offsets = [1, 0], sizes = [8, 32], strides = [1, 1]} : vector<9x32xf32> to vector<8x32xf32>
    %c1_21 = arith.constant 1 : index
    %c0_22 = arith.constant 0 : index
    %c0_23 = arith.constant 0 : index
    %35 = vector.load %arg4[%c1_21, %c0_22, %c0_23] : memref<2x32x32xbf16, #tpu.memory_space<vmem>>, vector<1x32x32xbf16>
    %36 = vector.shape_cast %35 : vector<1x32x32xbf16> to vector<32x32xbf16>
    %37 = arith.truncf %34 : vector<8x32xf32> to vector<8x32xbf16>
    %cst_24 = arith.constant dense<0.000000e+00> : vector<8x32xf32>
    %38 = tpu.matmul %37, %36, %cst_24 {dimension_numbers = #tpu.dot_dimension_numbers<[1], [0], [0], [1], [0, 0, 1, 1], [], []>} : vector<8x32xbf16>, vector<32x32xbf16>, vector<8x32xf32> -> vector<8x32xf32>
    %39 = arith.addf %33, %38 : vector<8x32xf32>
    %cst_25 = arith.constant 0.000000e+00 : f32
    %40 = vector.broadcast %cst_25 : f32 to vector<8x32xf32>
    %41 = arith.maximumf %39, %40 : vector<8x32xf32>
    %42 = arith.addf %41, %1 : vector<8x32xf32>
    %cst_26 = arith.constant 0.000000e+00 : f32
    %43 = vector.broadcast %cst_26 : f32 to vector<8x32xf32>
    %44 = arith.maximumf %42, %43 : vector<8x32xf32>
    %c0_27 = arith.constant 0 : index
    %c0_28 = arith.constant 0 : index
    %c0_29 = arith.constant 0 : index
    %45 = vector.load %arg6[%c0_27, %c0_28, %c0_29] : memref<1x8x32xf32, #tpu.memory_space<vmem>>, vector<1x8x32xf32>
    %46 = vector.shape_cast %45 : vector<1x8x32xf32> to vector<8x32xf32>
    %47 = vector.shape_cast %44 : vector<8x32xf32> to vector<1x8x32xf32>
    tpu.vector_store %arg6[%c0_27, %c0_28, %c0_29], %47 {strides = array<i32>} : memref<1x8x32xf32, #tpu.memory_space<vmem>>, vector<1x8x32xf32>,
    return
  }
  func.func @transform_0(%arg0: i32) -> (i32, i32, i32) {
    %c0_i32 = arith.constant 0 : i32
    %c0_i32_0 = arith.constant 0 : i32
    %c0_i32_1 = arith.constant 0 : i32
    return %arg0, %c0_i32, %c0_i32_0 : i32, i32, i32
  }
  func.func @transform_1(%arg0: i32) -> (i32, i32, i32) {
    %c0_i32 = arith.constant 0 : i32
    %c0_i32_0 = arith.constant 0 : i32
    %c0_i32_1 = arith.constant 0 : i32
    %c0_i32_2 = arith.constant 0 : i32
    return %c0_i32, %c0_i32_0, %c0_i32_1 : i32, i32, i32
  }
  func.func @transform_2(%arg0: i32) -> (i32, i32) {
    %c0_i32 = arith.constant 0 : i32
    %c0_i32_0 = arith.constant 0 : i32
    %c0_i32_1 = arith.constant 0 : i32
    return %c0_i32, %c0_i32_0 : i32, i32
  }
  func.func @transform_3(%arg0: i32) -> (i32, i32, i32) {
    %c0_i32 = arith.constant 0 : i32
    %c0_i32_0 = arith.constant 0 : i32
    %c0_i32_1 = arith.constant 0 : i32
    %c0_i32_2 = arith.constant 0 : i32
    return %c0_i32, %c0_i32_0, %c0_i32_1 : i32, i32, i32
  }
  func.func @transform_4(%arg0: i32) -> (i32, i32) {
    %c0_i32 = arith.constant 0 : i32
    %c0_i32_0 = arith.constant 0 : i32
    %c0_i32_1 = arith.constant 0 : i32
    return %c0_i32, %c0_i32_0 : i32, i32
  }
  func.func @transform_5(%arg0: i32) -> (i32, i32, i32) {
    %c0_i32 = arith.constant 0 : i32
    %c0_i32_0 = arith.constant 0 : i32
    %c0_i32_1 = arith.constant 0 : i32
    return %arg0, %c0_i32, %c0_i32_0 : i32, i32, i32
  }
}

module attributes {stable_mosaic.version = 11 : i64} {
  func.func @_transformer_kernel(%arg0: i32, %arg1: i32, %arg2: memref<1x1x8x32xf32, #tpu.memory_space<vmem>>, %arg3: memref<1x1x8x32xf32, #tpu.memory_space<vmem>>, %arg4: memref<1x32x32xbf16, #tpu.memory_space<vmem>>, %arg5: memref<1x1x32xf32, #tpu.memory_space<vmem>>, %arg6: memref<1x32x32xbf16, #tpu.memory_space<vmem>>, %arg7: memref<1x1x32xf32, #tpu.memory_space<vmem>>, %arg8: memref<1x32x32xbf16, #tpu.memory_space<vmem>>, %arg9: memref<1x1x32xf32, #tpu.memory_space<vmem>>, %arg10: memref<1x1x32xf32, #tpu.memory_space<vmem>>, %arg11: memref<1x1x32xf32, #tpu.memory_space<vmem>>, %arg12: memref<1x1x8x32xf32, #tpu.memory_space<vmem>>) attributes {dimension_semantics = [#tpu.dimension_semantics<parallel>, #tpu.dimension_semantics<parallel>], iteration_bounds = array<i64: 2, 2>, scalar_prefetch = 0 : i64, scratch_operands = 0 : i64, tpu.core_type = #tpu.core_type<tc>, window_params = [{transform_indices = @transform_0, window_bounds = array<i64: 1, 1, 8, 32>}, {transform_indices = @transform_1, window_bounds = array<i64: 1, 1, 8, 32>}, {transform_indices = @transform_2, window_bounds = array<i64: 1, 32, 32>}, {transform_indices = @transform_3, window_bounds = array<i64: 1, 1, 32>}, {transform_indices = @transform_4, window_bounds = array<i64: 1, 32, 32>}, {transform_indices = @transform_5, window_bounds = array<i64: 1, 1, 32>}, {transform_indices = @transform_6, window_bounds = array<i64: 1, 32, 32>}, {transform_indices = @transform_7, window_bounds = array<i64: 1, 1, 32>}, {transform_indices = @transform_8, window_bounds = array<i64: 1, 1, 32>}, {transform_indices = @transform_9, window_bounds = array<i64: 1, 1, 32>}, {transform_indices = @transform_10, window_bounds = array<i64: 1, 1, 8, 32>}]} {
    %c0 = arith.constant 0 : index
    %c0_0 = arith.constant 0 : index
    %c0_1 = arith.constant 0 : index
    %c0_2 = arith.constant 0 : index
    %0 = vector.load %arg2[%c0, %c0_0, %c0_1, %c0_2] : memref<1x1x8x32xf32, #tpu.memory_space<vmem>>, vector<1x1x8x32xf32>
    %1 = vector.shape_cast %0 : vector<1x1x8x32xf32> to vector<8x32xf32>
    %c0_3 = arith.constant 0 : index
    %c0_4 = arith.constant 0 : index
    %c0_5 = arith.constant 0 : index
    %c0_6 = arith.constant 0 : index
    %2 = vector.load %arg3[%c0_3, %c0_4, %c0_5, %c0_6] : memref<1x1x8x32xf32, #tpu.memory_space<vmem>>, vector<1x1x8x32xf32>
    %3 = vector.shape_cast %2 : vector<1x1x8x32xf32> to vector<8x32xf32>
    %c0_7 = arith.constant 0 : index
    %c0_8 = arith.constant 0 : index
    %c0_9 = arith.constant 0 : index
    %4 = vector.load %arg4[%c0_7, %c0_8, %c0_9] : memref<1x32x32xbf16, #tpu.memory_space<vmem>>, vector<1x32x32xbf16>
    %5 = vector.shape_cast %4 : vector<1x32x32xbf16> to vector<32x32xbf16>
    %6 = arith.truncf %1 : vector<8x32xf32> to vector<8x32xbf16>
    %cst = arith.constant dense<0.000000e+00> : vector<8x32xf32>
    %7 = tpu.matmul %6, %5, %cst {dimension_numbers = #tpu.dot_dimension_numbers<[1], [0], [0], [1], [0, 0, 1, 1], [], []>} : vector<8x32xbf16>, vector<32x32xbf16>, vector<8x32xf32> -> vector<8x32xf32>
    %c0_10 = arith.constant 0 : index
    %c0_11 = arith.constant 0 : index
    %c0_12 = arith.constant 0 : index
    %8 = vector.load %arg5[%c0_10, %c0_11, %c0_12] : memref<1x1x32xf32, #tpu.memory_space<vmem>>, vector<1x1x32xf32>
    %9 = vector.shape_cast %8 : vector<1x1x32xf32> to vector<1x32xf32>
    %10 = vector.broadcast %9 : vector<1x32xf32> to vector<8x32xf32>
    %11 = arith.addf %7, %10 : vector<8x32xf32>
    %c0_13 = arith.constant 0 : index
    %c0_14 = arith.constant 0 : index
    %c0_15 = arith.constant 0 : index
    %12 = vector.load %arg6[%c0_13, %c0_14, %c0_15] : memref<1x32x32xbf16, #tpu.memory_space<vmem>>, vector<1x32x32xbf16>
    %13 = vector.shape_cast %12 : vector<1x32x32xbf16> to vector<32x32xbf16>
    %14 = arith.truncf %3 : vector<8x32xf32> to vector<8x32xbf16>
    %cst_16 = arith.constant dense<0.000000e+00> : vector<8x32xf32>
    %15 = tpu.matmul %14, %13, %cst_16 {dimension_numbers = #tpu.dot_dimension_numbers<[1], [0], [0], [1], [0, 0, 1, 1], [], []>} : vector<8x32xbf16>, vector<32x32xbf16>, vector<8x32xf32> -> vector<8x32xf32>
    %c0_17 = arith.constant 0 : index
    %c0_18 = arith.constant 0 : index
    %c0_19 = arith.constant 0 : index
    %16 = vector.load %arg7[%c0_17, %c0_18, %c0_19] : memref<1x1x32xf32, #tpu.memory_space<vmem>>, vector<1x1x32xf32>
    %17 = vector.shape_cast %16 : vector<1x1x32xf32> to vector<1x32xf32>
    %18 = vector.broadcast %17 : vector<1x32xf32> to vector<8x32xf32>
    %19 = arith.addf %15, %18 : vector<8x32xf32>
    %20 = vector.shape_cast %11 : vector<8x32xf32> to vector<8x4x8xf32>
    %21 = tpu.transpose %20, [1, 0, 2] : vector<8x4x8xf32> -> vector<4x8x8xf32>
    %22 = vector.shape_cast %19 : vector<8x32xf32> to vector<8x4x8xf32>
    %23 = tpu.transpose %22, [1, 0, 2] : vector<8x4x8xf32> -> vector<4x8x8xf32>
    %cst_20 = arith.constant 0.353553385 : f32
    %24 = vector.broadcast %cst_20 : f32 to vector<4x8x8xf32>
    %25 = arith.mulf %21, %24 : vector<4x8x8xf32>
    %26 = arith.truncf %25 : vector<4x8x8xf32> to vector<4x8x8xbf16>
    %27 = arith.truncf %21 : vector<4x8x8xf32> to vector<4x8x8xbf16>
    "tpu.trace_start"() <{level = 10 : i32, message = "hqd,hkd->hqk"}> : () -> ()
    %cst_21 = arith.constant dense<0.000000e+00> : vector<4x8x8xf32>
    %28 = tpu.matmul %26, %27, %cst_21 {dimension_numbers = #tpu.dot_dimension_numbers<[2], [2], [1], [1], [0, 0, 0, 1, 1, 1], [0], [0]>} : vector<4x8x8xbf16>, vector<4x8x8xbf16>, vector<4x8x8xf32> -> vector<4x8x8xf32>
    "tpu.trace_stop"() : () -> ()
    %29 = tpu.iota {dimensions = array<i32: 0>} : vector<8x8xi32>
    %30 = tpu.iota {dimensions = array<i32: 1>} : vector<8x8xi32>
    %31 = arith.cmpi sle, %30, %29 : vector<8x8xi32>
    %cst_22 = arith.constant 0.000000e+00 : f32
    %cst_23 = arith.constant -1.000000e+30 : f32
    %32 = vector.broadcast %cst_22 : f32 to vector<8x8xf32>
    %33 = vector.broadcast %cst_23 : f32 to vector<8x8xf32>
    %34 = arith.select %31, %32, %33 : vector<8x8xi1>, vector<8x8xf32>
    %35 = vector.shape_cast %34 : vector<8x8xf32> to vector<1x8x8xf32>
    %36 = vector.broadcast %35 : vector<1x8x8xf32> to vector<4x8x8xf32>
    %37 = arith.addf %28, %36 : vector<4x8x8xf32>
    %cst_24 = arith.constant dense<0xFF800000> : vector<4x8xf32>
    %38 = vector.multi_reduction <maximumf>, %37, %cst_24 [2] : vector<4x8x8xf32> to vector<4x8xf32>
    %39 = vector.shape_cast %38 : vector<4x8xf32> to vector<4x8x1xf32>
    %40 = vector.broadcast %39 : vector<4x8x1xf32> to vector<4x8x8xf32>
    %41 = arith.subf %37, %40 : vector<4x8x8xf32>
    %42 = math.exp %41 : vector<4x8x8xf32>
    %cst_25 = arith.constant dense<0.000000e+00> : vector<4x8xf32>
    %43 = vector.multi_reduction <add>, %42, %cst_25 [2] : vector<4x8x8xf32> to vector<4x8xf32>
    %44 = vector.shape_cast %43 : vector<4x8xf32> to vector<4x8x1xf32>
    %45 = tpu.reciprocal %44 {approx = true} : vector<4x8x1xf32> -> vector<4x8x1xf32>
    %46 = vector.broadcast %45 : vector<4x8x1xf32> to vector<4x8x8xf32>
    %47 = arith.mulf %42, %46 : vector<4x8x8xf32>
    %48 = arith.truncf %47 : vector<4x8x8xf32> to vector<4x8x8xbf16>
    %49 = arith.truncf %23 : vector<4x8x8xf32> to vector<4x8x8xbf16>
    "tpu.trace_start"() <{level = 10 : i32, message = "hqk,hkd->hqd"}> : () -> ()
    %cst_26 = arith.constant dense<0.000000e+00> : vector<4x8x8xf32>
    %50 = tpu.matmul %48, %49, %cst_26 {dimension_numbers = #tpu.dot_dimension_numbers<[2], [1], [1], [2], [0, 0, 0, 1, 1, 2], [0], [0]>} : vector<4x8x8xbf16>, vector<4x8x8xbf16>, vector<4x8x8xf32> -> vector<4x8x8xf32>
    "tpu.trace_stop"() : () -> ()
    %51 = tpu.transpose %50, [1, 0, 2] : vector<4x8x8xf32> -> vector<8x4x8xf32>
    %52 = vector.shape_cast %51 : vector<8x4x8xf32> to vector<8x32xf32>
    %c0_27 = arith.constant 0 : index
    %c0_28 = arith.constant 0 : index
    %c0_29 = arith.constant 0 : index
    %53 = vector.load %arg8[%c0_27, %c0_28, %c0_29] : memref<1x32x32xbf16, #tpu.memory_space<vmem>>, vector<1x32x32xbf16>
    %54 = vector.shape_cast %53 : vector<1x32x32xbf16> to vector<32x32xbf16>
    %55 = arith.truncf %52 : vector<8x32xf32> to vector<8x32xbf16>
    %cst_30 = arith.constant dense<0.000000e+00> : vector<8x32xf32>
    %56 = tpu.matmul %55, %54, %cst_30 {dimension_numbers = #tpu.dot_dimension_numbers<[1], [0], [0], [1], [0, 0, 1, 1], [], []>} : vector<8x32xbf16>, vector<32x32xbf16>, vector<8x32xf32> -> vector<8x32xf32>
    %c0_31 = arith.constant 0 : index
    %c0_32 = arith.constant 0 : index
    %c0_33 = arith.constant 0 : index
    %57 = vector.load %arg9[%c0_31, %c0_32, %c0_33] : memref<1x1x32xf32, #tpu.memory_space<vmem>>, vector<1x1x32xf32>
    %58 = vector.shape_cast %57 : vector<1x1x32xf32> to vector<1x32xf32>
    %59 = vector.broadcast %58 : vector<1x32xf32> to vector<8x32xf32>
    %60 = arith.addf %56, %59 : vector<8x32xf32>
    %61 = arith.addf %1, %60 : vector<8x32xf32>
    %c0_34 = arith.constant 0 : index
    %c0_35 = arith.constant 0 : index
    %c0_36 = arith.constant 0 : index
    %62 = vector.load %arg10[%c0_34, %c0_35, %c0_36] : memref<1x1x32xf32, #tpu.memory_space<vmem>>, vector<1x1x32xf32>
    %63 = vector.shape_cast %62 : vector<1x1x32xf32> to vector<1x32xf32>
    %c0_37 = arith.constant 0 : index
    %c0_38 = arith.constant 0 : index
    %c0_39 = arith.constant 0 : index
    %64 = vector.load %arg11[%c0_37, %c0_38, %c0_39] : memref<1x1x32xf32, #tpu.memory_space<vmem>>, vector<1x1x32xf32>
    %65 = vector.shape_cast %64 : vector<1x1x32xf32> to vector<1x32xf32>
    %cst_40 = arith.constant dense<0.000000e+00> : vector<8xf32>
    %66 = vector.multi_reduction <add>, %61, %cst_40 [1] : vector<8x32xf32> to vector<8xf32>
    %67 = vector.shape_cast %66 : vector<8xf32> to vector<8x1xf32>
    %cst_41 = arith.constant 3.200000e+01 : f32
    %68 = vector.broadcast %cst_41 : f32 to vector<8x1xf32>
    %69 = arith.divf %67, %68 : vector<8x1xf32>
    %70 = vector.broadcast %69 : vector<8x1xf32> to vector<8x32xf32>
    %71 = arith.subf %61, %70 : vector<8x32xf32>
    %72 = arith.mulf %71, %71 : vector<8x32xf32>
    %cst_42 = arith.constant dense<0.000000e+00> : vector<8xf32>
    %73 = vector.multi_reduction <add>, %72, %cst_42 [1] : vector<8x32xf32> to vector<8xf32>
    %74 = vector.shape_cast %73 : vector<8xf32> to vector<8x1xf32>
    %cst_43 = arith.constant 3.200000e+01 : f32
    %75 = vector.broadcast %cst_43 : f32 to vector<8x1xf32>
    %76 = arith.divf %74, %75 : vector<8x1xf32>
    %77 = vector.broadcast %69 : vector<8x1xf32> to vector<8x32xf32>
    %78 = arith.subf %61, %77 : vector<8x32xf32>
    %cst_44 = arith.constant 9.99999974E-6 : f32
    %79 = vector.broadcast %cst_44 : f32 to vector<8x1xf32>
    %80 = arith.addf %76, %79 : vector<8x1xf32>
    %81 = math.rsqrt %80 : vector<8x1xf32>
    %82 = vector.broadcast %81 : vector<8x1xf32> to vector<8x32xf32>
    %83 = arith.mulf %78, %82 : vector<8x32xf32>
    %84 = vector.broadcast %63 : vector<1x32xf32> to vector<8x32xf32>
    %85 = arith.mulf %83, %84 : vector<8x32xf32>
    %86 = vector.broadcast %65 : vector<1x32xf32> to vector<8x32xf32>
    %87 = arith.addf %85, %86 : vector<8x32xf32>
    %c0_45 = arith.constant 0 : index
    %c0_46 = arith.constant 0 : index
    %c0_47 = arith.constant 0 : index
    %c0_48 = arith.constant 0 : index
    %88 = vector.load %arg12[%c0_45, %c0_46, %c0_47, %c0_48] : memref<1x1x8x32xf32, #tpu.memory_space<vmem>>, vector<1x1x8x32xf32>
    %89 = vector.shape_cast %88 : vector<1x1x8x32xf32> to vector<8x32xf32>
    %90 = vector.shape_cast %87 : vector<8x32xf32> to vector<1x1x8x32xf32>
    tpu.vector_store %arg12[%c0_45, %c0_46, %c0_47, %c0_48], %90 {strides = array<i32>} : memref<1x1x8x32xf32, #tpu.memory_space<vmem>>, vector<1x1x8x32xf32>,
    return
  }
  func.func @transform_0(%arg0: i32, %arg1: i32) -> (i32, i32, i32, i32) {
    %c0_i32 = arith.constant 0 : i32
    %c0_i32_0 = arith.constant 0 : i32
    %c0_i32_1 = arith.constant 0 : i32
    return %arg0, %arg1, %c0_i32, %c0_i32_0 : i32, i32, i32, i32
  }
  func.func @transform_1(%arg0: i32, %arg1: i32) -> (i32, i32, i32, i32) {
    %c0_i32 = arith.constant 0 : i32
    %c0_i32_0 = arith.constant 0 : i32
    %c0_i32_1 = arith.constant 0 : i32
    return %arg0, %arg1, %c0_i32, %c0_i32_0 : i32, i32, i32, i32
  }
  func.func @transform_2(%arg0: i32, %arg1: i32) -> (i32, i32, i32) {
    %c0_i32 = arith.constant 0 : i32
    %c0_i32_0 = arith.constant 0 : i32
    %c0_i32_1 = arith.constant 0 : i32
    return %arg0, %c0_i32, %c0_i32_0 : i32, i32, i32
  }
  func.func @transform_3(%arg0: i32, %arg1: i32) -> (i32, i32, i32) {
    %c0_i32 = arith.constant 0 : i32
    %c0_i32_0 = arith.constant 0 : i32
    %c0_i32_1 = arith.constant 0 : i32
    return %arg0, %c0_i32, %c0_i32_0 : i32, i32, i32
  }
  func.func @transform_4(%arg0: i32, %arg1: i32) -> (i32, i32, i32) {
    %c0_i32 = arith.constant 0 : i32
    %c0_i32_0 = arith.constant 0 : i32
    %c0_i32_1 = arith.constant 0 : i32
    return %arg0, %c0_i32, %c0_i32_0 : i32, i32, i32
  }
  func.func @transform_5(%arg0: i32, %arg1: i32) -> (i32, i32, i32) {
    %c0_i32 = arith.constant 0 : i32
    %c0_i32_0 = arith.constant 0 : i32
    %c0_i32_1 = arith.constant 0 : i32
    return %arg0, %c0_i32, %c0_i32_0 : i32, i32, i32
  }
  func.func @transform_6(%arg0: i32, %arg1: i32) -> (i32, i32, i32) {
    %c0_i32 = arith.constant 0 : i32
    %c0_i32_0 = arith.constant 0 : i32
    %c0_i32_1 = arith.constant 0 : i32
    return %arg0, %c0_i32, %c0_i32_0 : i32, i32, i32
  }
  func.func @transform_7(%arg0: i32, %arg1: i32) -> (i32, i32, i32) {
    %c0_i32 = arith.constant 0 : i32
    %c0_i32_0 = arith.constant 0 : i32
    %c0_i32_1 = arith.constant 0 : i32
    return %arg0, %c0_i32, %c0_i32_0 : i32, i32, i32
  }
  func.func @transform_8(%arg0: i32, %arg1: i32) -> (i32, i32, i32) {
    %c0_i32 = arith.constant 0 : i32
    %c0_i32_0 = arith.constant 0 : i32
    %c0_i32_1 = arith.constant 0 : i32
    return %arg0, %c0_i32, %c0_i32_0 : i32, i32, i32
  }
  func.func @transform_9(%arg0: i32, %arg1: i32) -> (i32, i32, i32) {
    %c0_i32 = arith.constant 0 : i32
    %c0_i32_0 = arith.constant 0 : i32
    %c0_i32_1 = arith.constant 0 : i32
    return %arg0, %c0_i32, %c0_i32_0 : i32, i32, i32
  }
  func.func @transform_10(%arg0: i32, %arg1: i32) -> (i32, i32, i32, i32) {
    %c0_i32 = arith.constant 0 : i32
    %c0_i32_0 = arith.constant 0 : i32
    %c0_i32_1 = arith.constant 0 : i32
    return %arg0, %arg1, %c0_i32, %c0_i32_0 : i32, i32, i32, i32
  }
}

module attributes {stable_mosaic.version = 11 : i64} {
  func.func @_ffn_kernel(%arg0: i32, %arg1: memref<16x64xf32, #tpu.memory_space<vmem>>, %arg2: memref<64x32xbf16, #tpu.memory_space<vmem>>, %arg3: memref<1x32xf32, #tpu.memory_space<vmem>>, %arg4: memref<32x32xbf16, #tpu.memory_space<vmem>>, %arg5: memref<1x32xf32, #tpu.memory_space<vmem>>, %arg6: memref<16x32xf32, #tpu.memory_space<vmem>>) attributes {dimension_semantics = [#tpu.dimension_semantics<parallel>], iteration_bounds = array<i64: 1>, scalar_prefetch = 0 : i64, scratch_operands = 0 : i64, tpu.core_type = #tpu.core_type<tc>, window_params = [{transform_indices = @transform_0, window_bounds = array<i64: 16, 64>}, {pipeline_mode = #tpu.pipeline_mode<synchronous>, transform_indices = @transform_1, window_bounds = array<i64: 64, 32>}, {pipeline_mode = #tpu.pipeline_mode<synchronous>, transform_indices = @transform_2, window_bounds = array<i64: 1, 32>}, {pipeline_mode = #tpu.pipeline_mode<synchronous>, transform_indices = @transform_3, window_bounds = array<i64: 32, 32>}, {pipeline_mode = #tpu.pipeline_mode<synchronous>, transform_indices = @transform_4, window_bounds = array<i64: 1, 32>}, {transform_indices = @transform_5, window_bounds = array<i64: 16, 32>}]} {
    %c0 = arith.constant 0 : index
    %c0_0 = arith.constant 0 : index
    %0 = vector.load %arg1[%c0, %c0_0] : memref<16x64xf32, #tpu.memory_space<vmem>>, vector<16x64xf32>
    %c0_1 = arith.constant 0 : index
    %c0_2 = arith.constant 0 : index
    %1 = vector.load %arg2[%c0_1, %c0_2] : memref<64x32xbf16, #tpu.memory_space<vmem>>, vector<64x32xbf16>
    %2 = arith.truncf %0 : vector<16x64xf32> to vector<16x64xbf16>
    %cst = arith.constant dense<0.000000e+00> : vector<16x32xf32>
    %3 = tpu.matmul %2, %1, %cst {dimension_numbers = #tpu.dot_dimension_numbers<[1], [0], [0], [1], [0, 0, 1, 1], [], []>} : vector<16x64xbf16>, vector<64x32xbf16>, vector<16x32xf32> -> vector<16x32xf32>
    %c0_3 = arith.constant 0 : index
    %c0_4 = arith.constant 0 : index
    %4 = vector.load %arg3[%c0_3, %c0_4] : memref<1x32xf32, #tpu.memory_space<vmem>>, vector<1x32xf32>
    %5 = vector.broadcast %4 : vector<1x32xf32> to vector<16x32xf32>
    %6 = arith.addf %3, %5 : vector<16x32xf32>
    %cst_5 = arith.constant 0.000000e+00 : f32
    %7 = vector.broadcast %cst_5 : f32 to vector<16x32xf32>
    %8 = arith.maximumf %6, %7 : vector<16x32xf32>
    %c0_6 = arith.constant 0 : index
    %c0_7 = arith.constant 0 : index
    %9 = vector.load %arg4[%c0_6, %c0_7] : memref<32x32xbf16, #tpu.memory_space<vmem>>, vector<32x32xbf16>
    %10 = arith.truncf %8 : vector<16x32xf32> to vector<16x32xbf16>
    %cst_8 = arith.constant dense<0.000000e+00> : vector<16x32xf32>
    %11 = tpu.matmul %10, %9, %cst_8 {dimension_numbers = #tpu.dot_dimension_numbers<[1], [0], [0], [1], [0, 0, 1, 1], [], []>} : vector<16x32xbf16>, vector<32x32xbf16>, vector<16x32xf32> -> vector<16x32xf32>
    %c0_9 = arith.constant 0 : index
    %c0_10 = arith.constant 0 : index
    %12 = vector.load %arg5[%c0_9, %c0_10] : memref<1x32xf32, #tpu.memory_space<vmem>>, vector<1x32xf32>
    %13 = vector.broadcast %12 : vector<1x32xf32> to vector<16x32xf32>
    %14 = arith.addf %11, %13 : vector<16x32xf32>
    %c0_11 = arith.constant 0 : index
    %c0_12 = arith.constant 0 : index
    %15 = vector.load %arg6[%c0_11, %c0_12] : memref<16x32xf32, #tpu.memory_space<vmem>>, vector<16x32xf32>
    tpu.vector_store %arg6[%c0_11, %c0_12], %14 {strides = array<i32>} : memref<16x32xf32, #tpu.memory_space<vmem>>, vector<16x32xf32>,
    return
  }
  func.func @transform_0(%arg0: i32) -> (i32, i32) {
    %c0_i32 = arith.constant 0 : i32
    %c0_i32_0 = arith.constant 0 : i32
    return %arg0, %c0_i32 : i32, i32
  }
  func.func @transform_1(%arg0: i32) -> (i32, i32) {
    %c0_i32 = arith.constant 0 : i32
    %c0_i32_0 = arith.constant 0 : i32
    %c0_i32_1 = arith.constant 0 : i32
    return %c0_i32, %c0_i32_0 : i32, i32
  }
  func.func @transform_2(%arg0: i32) -> (i32, i32) {
    %c0_i32 = arith.constant 0 : i32
    %c0_i32_0 = arith.constant 0 : i32
    %c0_i32_1 = arith.constant 0 : i32
    return %c0_i32, %c0_i32_0 : i32, i32
  }
  func.func @transform_3(%arg0: i32) -> (i32, i32) {
    %c0_i32 = arith.constant 0 : i32
    %c0_i32_0 = arith.constant 0 : i32
    %c0_i32_1 = arith.constant 0 : i32
    return %c0_i32, %c0_i32_0 : i32, i32
  }
  func.func @transform_4(%arg0: i32) -> (i32, i32) {
    %c0_i32 = arith.constant 0 : i32
    %c0_i32_0 = arith.constant 0 : i32
    %c0_i32_1 = arith.constant 0 : i32
    return %c0_i32, %c0_i32_0 : i32, i32
  }
  func.func @transform_5(%arg0: i32) -> (i32, i32) {
    %c0_i32 = arith.constant 0 : i32
    %c0_i32_0 = arith.constant 0 : i32
    return %arg0, %c0_i32 : i32, i32
  }
}

module attributes {stable_mosaic.version = 11 : i64} {
  func.func @_tcn_block_kernel(%arg0: i32, %arg1: memref<1x8x32xf32, #tpu.memory_space<vmem>>, %arg2: memref<2x32x32xbf16, #tpu.memory_space<vmem>>, %arg3: memref<1x32xf32, #tpu.memory_space<vmem>>, %arg4: memref<2x32x32xbf16, #tpu.memory_space<vmem>>, %arg5: memref<1x32xf32, #tpu.memory_space<vmem>>, %arg6: memref<1x8x32xf32, #tpu.memory_space<vmem>>) attributes {dimension_semantics = [#tpu.dimension_semantics<parallel>], iteration_bounds = array<i64: 2>, scalar_prefetch = 0 : i64, scratch_operands = 0 : i64, tpu.core_type = #tpu.core_type<tc>, window_params = [{transform_indices = @transform_0, window_bounds = array<i64: 1, 8, 32>}, {pipeline_mode = #tpu.pipeline_mode<synchronous>, transform_indices = @transform_1, window_bounds = array<i64: 2, 32, 32>}, {pipeline_mode = #tpu.pipeline_mode<synchronous>, transform_indices = @transform_2, window_bounds = array<i64: 1, 32>}, {pipeline_mode = #tpu.pipeline_mode<synchronous>, transform_indices = @transform_3, window_bounds = array<i64: 2, 32, 32>}, {pipeline_mode = #tpu.pipeline_mode<synchronous>, transform_indices = @transform_4, window_bounds = array<i64: 1, 32>}, {transform_indices = @transform_5, window_bounds = array<i64: 1, 8, 32>}]} {
    %c0 = arith.constant 0 : index
    %c0_0 = arith.constant 0 : index
    %c0_1 = arith.constant 0 : index
    %0 = vector.load %arg1[%c0, %c0_0, %c0_1] : memref<1x8x32xf32, #tpu.memory_space<vmem>>, vector<1x8x32xf32>
    %1 = vector.shape_cast %0 : vector<1x8x32xf32> to vector<8x32xf32>
    %cst = arith.constant 0.000000e+00 : f32
    %2 = vector.broadcast %cst : f32 to vector<2x32xf32>
    %3 = tpu.concatenate %2, %1 in 0 : vector<2x32xf32>, vector<8x32xf32> -> vector<10x32xf32>
    %cst_2 = arith.constant 0.000000e+00 : f32
    %4 = vector.broadcast %cst_2 : f32 to vector<8x32xf32>
    %c0_3 = arith.constant 0 : index
    %c0_4 = arith.constant 0 : index
    %5 = vector.load %arg3[%c0_3, %c0_4] : memref<1x32xf32, #tpu.memory_space<vmem>>, vector<1x32xf32>
    %6 = vector.broadcast %5 : vector<1x32xf32> to vector<8x32xf32>
    %7 = arith.addf %4, %6 : vector<8x32xf32>
    %8 = vector.extract_strided_slice %3 {offsets = [0, 0], sizes = [8, 32], strides = [1, 1]} : vector<10x32xf32> to vector<8x32xf32>
    %c0_5 = arith.constant 0 : index
    %c0_6 = arith.constant 0 : index
    %c0_7 = arith.constant 0 : index
    %9 = vector.load %arg2[%c0_5, %c0_6, %c0_7] : memref<2x32x32xbf16, #tpu.memory_space<vmem>>, vector<1x32x32xbf16>
    %10 = vector.shape_cast %9 : vector<1x32x32xbf16> to vector<32x32xbf16>
    %11 = arith.truncf %8 : vector<8x32xf32> to vector<8x32xbf16>
    %cst_8 = arith.constant dense<0.000000e+00> : vector<8x32xf32>
    %12 = tpu.matmul %11, %10, %cst_8 {dimension_numbers = #tpu.dot_dimension_numbers<[1], [0], [0], [1], [0, 0, 1, 1], [], []>} : vector<8x32xbf16>, vector<32x32xbf16>, vector<8x32xf32> -> vector<8x32xf32>
    %13 = arith.addf %7, %12 : vector<8x32xf32>
    %14 = vector.extract_strided_slice %3 {offsets = [2, 0], sizes = [8, 32], strides = [1, 1]} : vector<10x32xf32> to vector<8x32xf32>
    %c1 = arith.constant 1 : index
    %c0_9 = arith.constant 0 : index
    %c0_10 = arith.constant 0 : index
    %15 = vector.load %arg2[%c1, %c0_9, %c0_10] : memref<2x32x32xbf16, #tpu.memory_space<vmem>>, vector<1x32x32xbf16>
    %16 = vector.shape_cast %15 : vector<1x32x32xbf16> to vector<32x32xbf16>
    %17 = arith.truncf %14 : vector<8x32xf32> to vector<8x32xbf16>
    %cst_11 = arith.constant dense<0.000000e+00> : vector<8x32xf32>
    %18 = tpu.matmul %17, %16, %cst_11 {dimension_numbers = #tpu.dot_dimension_numbers<[1], [0], [0], [1], [0, 0, 1, 1], [], []>} : vector<8x32xbf16>, vector<32x32xbf16>, vector<8x32xf32> -> vector<8x32xf32>
    %19 = arith.addf %13, %18 : vector<8x32xf32>
    %cst_12 = arith.constant 0.000000e+00 : f32
    %20 = vector.broadcast %cst_12 : f32 to vector<8x32xf32>
    %21 = arith.maximumf %19, %20 : vector<8x32xf32>
    %cst_13 = arith.constant 0.000000e+00 : f32
    %22 = vector.broadcast %cst_13 : f32 to vector<2x32xf32>
    %23 = tpu.concatenate %22, %21 in 0 : vector<2x32xf32>, vector<8x32xf32> -> vector<10x32xf32>
    %cst_14 = arith.constant 0.000000e+00 : f32
    %24 = vector.broadcast %cst_14 : f32 to vector<8x32xf32>
    %c0_15 = arith.constant 0 : index
    %c0_16 = arith.constant 0 : index
    %25 = vector.load %arg5[%c0_15, %c0_16] : memref<1x32xf32, #tpu.memory_space<vmem>>, vector<1x32xf32>
    %26 = vector.broadcast %25 : vector<1x32xf32> to vector<8x32xf32>
    %27 = arith.addf %24, %26 : vector<8x32xf32>
    %28 = vector.extract_strided_slice %23 {offsets = [0, 0], sizes = [8, 32], strides = [1, 1]} : vector<10x32xf32> to vector<8x32xf32>
    %c0_17 = arith.constant 0 : index
    %c0_18 = arith.constant 0 : index
    %c0_19 = arith.constant 0 : index
    %29 = vector.load %arg4[%c0_17, %c0_18, %c0_19] : memref<2x32x32xbf16, #tpu.memory_space<vmem>>, vector<1x32x32xbf16>
    %30 = vector.shape_cast %29 : vector<1x32x32xbf16> to vector<32x32xbf16>
    %31 = arith.truncf %28 : vector<8x32xf32> to vector<8x32xbf16>
    %cst_20 = arith.constant dense<0.000000e+00> : vector<8x32xf32>
    %32 = tpu.matmul %31, %30, %cst_20 {dimension_numbers = #tpu.dot_dimension_numbers<[1], [0], [0], [1], [0, 0, 1, 1], [], []>} : vector<8x32xbf16>, vector<32x32xbf16>, vector<8x32xf32> -> vector<8x32xf32>
    %33 = arith.addf %27, %32 : vector<8x32xf32>
    %34 = vector.extract_strided_slice %23 {offsets = [2, 0], sizes = [8, 32], strides = [1, 1]} : vector<10x32xf32> to vector<8x32xf32>
    %c1_21 = arith.constant 1 : index
    %c0_22 = arith.constant 0 : index
    %c0_23 = arith.constant 0 : index
    %35 = vector.load %arg4[%c1_21, %c0_22, %c0_23] : memref<2x32x32xbf16, #tpu.memory_space<vmem>>, vector<1x32x32xbf16>
    %36 = vector.shape_cast %35 : vector<1x32x32xbf16> to vector<32x32xbf16>
    %37 = arith.truncf %34 : vector<8x32xf32> to vector<8x32xbf16>
    %cst_24 = arith.constant dense<0.000000e+00> : vector<8x32xf32>
    %38 = tpu.matmul %37, %36, %cst_24 {dimension_numbers = #tpu.dot_dimension_numbers<[1], [0], [0], [1], [0, 0, 1, 1], [], []>} : vector<8x32xbf16>, vector<32x32xbf16>, vector<8x32xf32> -> vector<8x32xf32>
    %39 = arith.addf %33, %38 : vector<8x32xf32>
    %cst_25 = arith.constant 0.000000e+00 : f32
    %40 = vector.broadcast %cst_25 : f32 to vector<8x32xf32>
    %41 = arith.maximumf %39, %40 : vector<8x32xf32>
    %42 = arith.addf %41, %1 : vector<8x32xf32>
    %cst_26 = arith.constant 0.000000e+00 : f32
    %43 = vector.broadcast %cst_26 : f32 to vector<8x32xf32>
    %44 = arith.maximumf %42, %43 : vector<8x32xf32>
    %c0_27 = arith.constant 0 : index
    %c0_28 = arith.constant 0 : index
    %c0_29 = arith.constant 0 : index
    %45 = vector.load %arg6[%c0_27, %c0_28, %c0_29] : memref<1x8x32xf32, #tpu.memory_space<vmem>>, vector<1x8x32xf32>
    %46 = vector.shape_cast %45 : vector<1x8x32xf32> to vector<8x32xf32>
    %47 = vector.shape_cast %44 : vector<8x32xf32> to vector<1x8x32xf32>
    tpu.vector_store %arg6[%c0_27, %c0_28, %c0_29], %47 {strides = array<i32>} : memref<1x8x32xf32, #tpu.memory_space<vmem>>, vector<1x8x32xf32>,
    return
  }
  func.func @transform_0(%arg0: i32) -> (i32, i32, i32) {
    %c0_i32 = arith.constant 0 : i32
    %c0_i32_0 = arith.constant 0 : i32
    %c0_i32_1 = arith.constant 0 : i32
    return %arg0, %c0_i32, %c0_i32_0 : i32, i32, i32
  }
  func.func @transform_1(%arg0: i32) -> (i32, i32, i32) {
    %c0_i32 = arith.constant 0 : i32
    %c0_i32_0 = arith.constant 0 : i32
    %c0_i32_1 = arith.constant 0 : i32
    %c0_i32_2 = arith.constant 0 : i32
    return %c0_i32, %c0_i32_0, %c0_i32_1 : i32, i32, i32
  }
  func.func @transform_2(%arg0: i32) -> (i32, i32) {
    %c0_i32 = arith.constant 0 : i32
    %c0_i32_0 = arith.constant 0 : i32
    %c0_i32_1 = arith.constant 0 : i32
    return %c0_i32, %c0_i32_0 : i32, i32
  }
  func.func @transform_3(%arg0: i32) -> (i32, i32, i32) {
    %c0_i32 = arith.constant 0 : i32
    %c0_i32_0 = arith.constant 0 : i32
    %c0_i32_1 = arith.constant 0 : i32
    %c0_i32_2 = arith.constant 0 : i32
    return %c0_i32, %c0_i32_0, %c0_i32_1 : i32, i32, i32
  }
  func.func @transform_4(%arg0: i32) -> (i32, i32) {
    %c0_i32 = arith.constant 0 : i32
    %c0_i32_0 = arith.constant 0 : i32
    %c0_i32_1 = arith.constant 0 : i32
    return %c0_i32, %c0_i32_0 : i32, i32
  }
  func.func @transform_5(%arg0: i32) -> (i32, i32, i32) {
    %c0_i32 = arith.constant 0 : i32
    %c0_i32_0 = arith.constant 0 : i32
    %c0_i32_1 = arith.constant 0 : i32
    return %arg0, %c0_i32, %c0_i32_0 : i32, i32, i32
  }
}

module attributes {stable_mosaic.version = 11 : i64} {
  func.func @_ffn_kernel(%arg0: i32, %arg1: memref<16x32xf32, #tpu.memory_space<vmem>>, %arg2: memref<32x16xbf16, #tpu.memory_space<vmem>>, %arg3: memref<1x16xf32, #tpu.memory_space<vmem>>, %arg4: memref<16x128xbf16, #tpu.memory_space<vmem>>, %arg5: memref<1x128xf32, #tpu.memory_space<vmem>>, %arg6: memref<16x128xf32, #tpu.memory_space<vmem>>) attributes {dimension_semantics = [#tpu.dimension_semantics<parallel>], iteration_bounds = array<i64: 1>, scalar_prefetch = 0 : i64, scratch_operands = 0 : i64, tpu.core_type = #tpu.core_type<tc>, window_params = [{transform_indices = @transform_0, window_bounds = array<i64: 16, 32>}, {pipeline_mode = #tpu.pipeline_mode<synchronous>, transform_indices = @transform_1, window_bounds = array<i64: 32, 16>}, {pipeline_mode = #tpu.pipeline_mode<synchronous>, transform_indices = @transform_2, window_bounds = array<i64: 1, 16>}, {pipeline_mode = #tpu.pipeline_mode<synchronous>, transform_indices = @transform_3, window_bounds = array<i64: 16, 128>}, {pipeline_mode = #tpu.pipeline_mode<synchronous>, transform_indices = @transform_4, window_bounds = array<i64: 1, 128>}, {transform_indices = @transform_5, window_bounds = array<i64: 16, 128>}]} {
    %c0 = arith.constant 0 : index
    %c0_0 = arith.constant 0 : index
    %0 = vector.load %arg1[%c0, %c0_0] : memref<16x32xf32, #tpu.memory_space<vmem>>, vector<16x32xf32>
    %c0_1 = arith.constant 0 : index
    %c0_2 = arith.constant 0 : index
    %1 = vector.load %arg2[%c0_1, %c0_2] : memref<32x16xbf16, #tpu.memory_space<vmem>>, vector<32x16xbf16>
    %2 = arith.truncf %0 : vector<16x32xf32> to vector<16x32xbf16>
    %cst = arith.constant dense<0.000000e+00> : vector<16x16xf32>
    %3 = tpu.matmul %2, %1, %cst {dimension_numbers = #tpu.dot_dimension_numbers<[1], [0], [0], [1], [0, 0, 1, 1], [], []>} : vector<16x32xbf16>, vector<32x16xbf16>, vector<16x16xf32> -> vector<16x16xf32>
    %c0_3 = arith.constant 0 : index
    %c0_4 = arith.constant 0 : index
    %4 = vector.load %arg3[%c0_3, %c0_4] : memref<1x16xf32, #tpu.memory_space<vmem>>, vector<1x16xf32>
    %5 = vector.broadcast %4 : vector<1x16xf32> to vector<16x16xf32>
    %6 = arith.addf %3, %5 : vector<16x16xf32>
    %cst_5 = arith.constant 0.000000e+00 : f32
    %7 = vector.broadcast %cst_5 : f32 to vector<16x16xf32>
    %8 = arith.maximumf %6, %7 : vector<16x16xf32>
    %c0_6 = arith.constant 0 : index
    %c0_7 = arith.constant 0 : index
    %9 = vector.load %arg4[%c0_6, %c0_7] : memref<16x128xbf16, #tpu.memory_space<vmem>>, vector<16x128xbf16>
    %10 = arith.truncf %8 : vector<16x16xf32> to vector<16x16xbf16>
    %cst_8 = arith.constant dense<0.000000e+00> : vector<16x128xf32>
    %11 = tpu.matmul %10, %9, %cst_8 {dimension_numbers = #tpu.dot_dimension_numbers<[1], [0], [0], [1], [0, 0, 1, 1], [], []>} : vector<16x16xbf16>, vector<16x128xbf16>, vector<16x128xf32> -> vector<16x128xf32>
    %c0_9 = arith.constant 0 : index
    %c0_10 = arith.constant 0 : index
    %12 = vector.load %arg5[%c0_9, %c0_10] : memref<1x128xf32, #tpu.memory_space<vmem>>, vector<1x128xf32>
    %13 = vector.broadcast %12 : vector<1x128xf32> to vector<16x128xf32>
    %14 = arith.addf %11, %13 : vector<16x128xf32>
    %15 = arith.negf %14 : vector<16x128xf32>
    %16 = math.exp %15 : vector<16x128xf32>
    %cst_11 = arith.constant 1.000000e+00 : f32
    %17 = vector.broadcast %cst_11 : f32 to vector<16x128xf32>
    %18 = arith.addf %17, %16 : vector<16x128xf32>
    %19 = arith.divf %17, %18 : vector<16x128xf32>
    %c0_12 = arith.constant 0 : index
    %c0_13 = arith.constant 0 : index
    %20 = vector.load %arg6[%c0_12, %c0_13] : memref<16x128xf32, #tpu.memory_space<vmem>>, vector<16x128xf32>
    tpu.vector_store %arg6[%c0_12, %c0_13], %19 {strides = array<i32>} : memref<16x128xf32, #tpu.memory_space<vmem>>, vector<16x128xf32>,
    return
  }
  func.func @transform_0(%arg0: i32) -> (i32, i32) {
    %c0_i32 = arith.constant 0 : i32
    %c0_i32_0 = arith.constant 0 : i32
    return %arg0, %c0_i32 : i32, i32
  }
  func.func @transform_1(%arg0: i32) -> (i32, i32) {
    %c0_i32 = arith.constant 0 : i32
    %c0_i32_0 = arith.constant 0 : i32
    %c0_i32_1 = arith.constant 0 : i32
    return %c0_i32, %c0_i32_0 : i32, i32
  }
  func.func @transform_2(%arg0: i32) -> (i32, i32) {
    %c0_i32 = arith.constant 0 : i32
    %c0_i32_0 = arith.constant 0 : i32
    %c0_i32_1 = arith.constant 0 : i32
    return %c0_i32, %c0_i32_0 : i32, i32
  }
  func.func @transform_3(%arg0: i32) -> (i32, i32) {
    %c0_i32 = arith.constant 0 : i32
    %c0_i32_0 = arith.constant 0 : i32
    %c0_i32_1 = arith.constant 0 : i32
    return %c0_i32, %c0_i32_0 : i32, i32
  }
  func.func @transform_4(%arg0: i32) -> (i32, i32) {
    %c0_i32 = arith.constant 0 : i32
    %c0_i32_0 = arith.constant 0 : i32
    %c0_i32_1 = arith.constant 0 : i32
    return %c0_i32, %c0_i32_0 : i32, i32
  }
  func.func @transform_5(%arg0: i32) -> (i32, i32) {
    %c0_i32 = arith.constant 0 : i32
    %c0_i32_0 = arith.constant 0 : i32
    return %arg0, %c0_i32 : i32, i32
  }
}

</mosaic_0001>

<bundles_post_ra>
// kernel: lskt_forward.6
= control target key start
LH: loop header
LB: loop body
LE: loop exit
PB: predicated region body
PF: predicated region fallthrough
CT: control target
= control target key end

     0   :  { %v231_v0 = vmov 0.0   ;;  %vm232_vm0 = vmmov 0   ;;  %vm63_vm1 = vcmask 523264   ;;  %vm134_vm2 = vcmask 261120   ;;  %s299_s1 = inlined_call_operand.vmem [shape: bf16[64,32], index: 1, kind: input, shape index: {}]   ;;  %s300_s0 = inlined_call_operand.vmem [shape: f32[16,64], index: 0, kind: input, shape index: {}]   ;;  %s301_s3 = inlined_call_operand.vmem [shape: bf16[32,32], index: 3, kind: input, shape index: {}]   ;;  %s302_s2 = inlined_call_operand.vmem [shape: f32[1,32], index: 2, kind: input, shape index: {}]   ;;  %s303_s4 = inlined_call_operand.vmem [shape: f32[1,32], index: 4, kind: input, shape index: {}]   ;;  %s304_s5 = inlined_call_operand.vmem [shape: f32[16,32], index: 5, kind: output, shape index: {}]  }
   0x1   :  { %203 = vmatprep.subr.bf16.mxu0 %v231_v0  ;;  %v225_v1 = vld [vmem:[%s299_s1 + $0x18] sm:$0xff]   ;;  %211 = vmatprep.mubr.msk.bf16.mxu0 %vm232_vm0, %v231_v0  ;;  %v226_v2 = vld [vmem:[%s299_s1 + $0x10] sm:$0xff]   ;;  %v227_v3 = vld [vmem:[%s299_s1 + $0x8] sm:$0xff]  }
   0x2   :  { %215 = vmatprep.subr.bf16.mxu1 %v231_v0  ;;  %219 = vmatprep.mubr.msk.bf16.mxu1 %vm232_vm0, %v231_v0  ;;  %v228_v4 = vld [vmem:[%s299_s1] sm:$0xff]   ;;  %v22_v6 = vld [vmem:[%s300_s0 + $0x8] sm:$0xff] }
   0x3   :  { %204 = vmatpush3.bf16.msra.mxu0 %v225_v1  ;;  %v21_v5 = vld [vmem:[%s300_s0] sm:$0xff]  ;;  %v229_v8 = vld [vmem:[%s301_s3 + $0x8] sm:$0xff]  }
   0x4   :  { %205 = vmatprep.subr.bf16.mxu0 %v231_v0  ;;  %v31_v7 = vpack.c.bf16 %v22_v6, %v21_v5  ;;  %216 = vmatpush3.bf16.msra.mxu1 %v229_v8  ;;  %v230_v9 = vld [vmem:[%s301_s3] sm:$0xff]  }
   0x5   :  { %217 = vmatprep.subr.bf16.mxu1 %v231_v0  ;;  %v185_v10 = vld [vmem:[%s302_s2] ss:$0 sm:$0xff] }
   0x6   :  { %v191_v20 = vld [vmem:[%s303_s4] ss:$0 sm:$0xff] }
   0x7   :  { %206 = vmatpush3.bf16.msra.mxu0 %v226_v2 }
   0x8   :  { %207 = vmatprep.subr.bf16.mxu0 %v231_v0  ;;  %218 = vmatpush3.bf16.msra.mxu1 %v230_v9 }
   0xb   :  { %208 = vmatpush3.bf16.msra.mxu0 %v227_v3 }
   0xc   :  { %209 = vmatprep.subr.bf16.mxu0 %v231_v0 }
   0xf   :  { %210 = vmatpush3.bf16.msra.mxu0 %v228_v4 }
  0x12   :  { %212 = vmatmul.mubr.msk.bf16.vlgmr.msra.gmra.mxu0 %vm63_vm1, %v31_v7 }
  0xd2   :  { %v101_v11 = vpop.f32.mrf.mxu0 }
  0xd3   :  { %v102_v13 = vadd.f32 %v185_v10, %v101_v11 }
  0xd4   :  { %v213_v12 = vpop.f32.mrf.mxu0 }
  0xd5   :  { %v108_v17 = vmax.f32 %v102_v13, 0.0 }
  0xd6   :  { %v104_v14 = vpop.f32.mrf.mxu0 }
  0xd7   :  { %v105_v15 = vadd.f32 %v185_v10, %v104_v14 }
  0xd8   :  { %v214_v16 = vpop.f32.mrf.mxu0 }
  0xd9   :  { %v109_v18 = vmax.f32 %v105_v15, 0.0 }
  0xdb   :  { %v114_v19 = vpack.c.bf16 %v109_v18, %v108_v17 }
  0xdd   :  { %220 = vmatmul.mubr.msk.bf16.vlgmr.msra.gmra.mxu1 %vm134_vm2, %v114_v19 }
 0x19d   :  { %v172_v21 = vpop.f32.mrf.mxu1 }
 0x19e   :  { %v173_v22 = vadd.f32 %v191_v20, %v172_v21 }
 0x19f   :  { %v221_v23 = vpop.f32.mrf.mxu1 }
 0x1a0   :  { %179 = vst.msk [vmem:[%s304_s5] sm:$0xff] %vm134_vm2, %v173_v22 }
 0x1a1   :  { %v175_v24 = vpop.f32.mrf.mxu1 }
 0x1a2   :  { %v176_v25 = vadd.f32 %v191_v20, %v175_v24 }
 0x1a3   :  { %v222_v26 = vpop.f32.mrf.mxu1 }
 0x1a4   :  { %180 = vst.msk [vmem:[%s304_s5 + $0x8] sm:$0xff] %vm134_vm2, %v176_v25 }

// kernel: lskt_forward.7
= control target key start
LH: loop header
LB: loop body
LE: loop exit
PB: predicated region body
PF: predicated region fallthrough
CT: control target
= control target key end

     0   :  { %s699_s18 = smov 0   ;;  %s764_s0 = inlined_call_operand.vmem [shape: f32[2,8,32], index: 0, kind: input, shape index: {}]   ;;  %s765_s1 = inlined_call_operand.vmem [shape: bf16[2,32,32], index: 1, kind: input, shape index: {}]   ;;  %s766_s2 = inlined_call_operand.vmem [shape: f32[1,32], index: 2, kind: input, shape index: {}]   ;;  %s767_s3 = inlined_call_operand.vmem [shape: bf16[2,32,32], index: 3, kind: input, shape index: {}]   ;;  %s768_s4 = inlined_call_operand.vmem [shape: f32[1,32], index: 4, kind: input, shape index: {}]   ;;  %s769_s5 = inlined_call_operand.vmem [shape: f32[2,8,32], index: 5, kind: output, shape index: {}]  }
   0x1 LB: > { %s566_s19 = sadd.s32 4294967295, %s665_s18   ;;  %p570_p0 = scmp.ge.s32.totalorder %s665_s18, 1  ;;  %s665_s18 = sphi %s699_s18, %s15_s18  }
   0x2   : > { %p186_p1 = scmp.lt.s32.totalorder %s665_s18, 3 }
   0x4   : > { %p187_p2 = pnand %p570_p0, %p186_p1 }
   0x5   : > { %p212_p3 = scmp.lt.s32.totalorder (!%p187_p2), %s566_s19, 1 }
   0x6   : > { %190 = sbr.rel (%p187_p2) target bundleno = 436 (0x1b4), region = 40 }
   0xb   : > { %v651_v0 = vld [vmem:[%s765_s1 + $0x8] sm:$0xff]   ;;  %v667_v1 = vmov 0.0   ;;  %v652_v2 = vld [vmem:[%s765_s1] sm:$0xff]   ;;  %vm668_vm0 = vmmov 0   ;;  %v653_v3 = vld [vmem:[%s765_s1 + $0x18] sm:$0xff]   ;;  %s771_s19 = smov (!%p212_p3, %s566_s19), 1 }
   0xc   : > { %609 = vmatprep.subr.bf16.mxu0 %v667_v1  ;;  %617 = vmatprep.subr.bf16.mxu1 %v667_v1  ;;  %v654_v4 = vld [vmem:[%s765_s1 + $0x10] sm:$0xff]   ;;  %s571_s28 = sshll.u32 %s771_s19, 3  ;;  %vm225_vm1 = vcmask 1040384   ;;  %vm252_vm2 = vcmask 261120   ;;  %v655_v14 = vld [vmem:[%s767_s3 + $0x8] sm:$0xff]   ;;  %v656_v15 = vld [vmem:[%s767_s3] sm:$0xff]  }
   0xd   : > { %610 = vmatpush3.bf16.msra.mxu0 %v651_v0  ;;  %613 = vmatprep.mubr.msk.bf16.mxu0 %vm668_vm0, %v667_v1  ;;  %s215_s6 = scalar_lea.vmem %s764_s0, %s571_s28  ;;  %v657_v16 = vld [vmem:[%s767_s3 + $0x18] sm:$0xff]   ;;  %v658_v17 = vld [vmem:[%s767_s3 + $0x10] sm:$0xff]   ;;  %v573_v18 = vld [vmem:[%s766_s2] ss:$0 sm:$0xff]  ;;  %s219_s23 = scalar_lea.vmem %s769_s5, %s571_s28 }
   0xe   : > { %611 = vmatprep.subr.bf16.mxu0 %v667_v1  ;;  %621 = vmatprep.mubr.msk.bf16.mxu1 %vm668_vm0, %v667_v1  ;;  %v221_v5 = vld [vmem:[%s215_s6] sm:$0xff] }
   0xf   : > { %618 = vmatpush3.bf16.msra.mxu1 %v653_v3  ;;  %v223_v6 = vrot.slane %v221_v5, 7  ;;  %v584_v39 = vld [vmem:[%s768_s4] ss:$0 sm:$0xff] }
  0x10   : > { %619 = vmatprep.subr.bf16.mxu1 %v667_v1 }
  0x11   : > { %612 = vmatpush3.bf16.msra.mxu0 %v652_v2  ;;  %v226_v7 = vsel %vm225_vm1, 0.0, %v223_v6 }
  0x12   : > { %625 = vmatprep.subr.bf16.mxu0 %v667_v1  ;;  %v239_v8 = vpack.c.bf16 %v226_v7, %v226_v7  ;;  %v302_v9 = vpack.c.bf16 %v223_v6, %v226_v7 }
  0x13   : > { %620 = vmatpush3.bf16.msra.mxu1 %v654_v4 }
  0x14   : > { %633 = vmatprep.subr.bf16.mxu1 %v667_v1  ;;  %614 = vmatmul.mubr.msk.bf16.vlgmr.msra.gmra.mxu0 %vm252_vm2, %v239_v8  ;;  %v304_v10 = vshrl.u32 %v302_v9, 16  ;;  %v306_v11 = vshll.u32 %v302_v9, 16 }
  0x15   : > { %629 = vmatprep.mubr.msk.bf16.mxu0 %vm668_vm0, %v667_v1  ;;  %626 = vmatpush3.bf16.msra.mxu0 %v655_v14 }
  0x16   : > { %v308_v12 = vrot.slane %v306_v11, 1  ;;  %627 = vmatprep.subr.bf16.mxu0 %v667_v1 }
  0x18   : > { %v309_v13 = vor.u32 %v308_v12, %v304_v10 }
  0x19   : > { %628 = vmatpush3.bf16.msra.mxu0 %v656_v15 }
  0x1a   : > { %622 = vmatmul.mubr.msk.bf16.vlgmr.msra.gmra.mxu1 %vm252_vm2, %v309_v13 }
  0x1b   : > { %637 = vmatprep.mubr.msk.bf16.mxu1 %vm668_vm0, %v667_v1  ;;  %634 = vmatpush3.bf16.msra.mxu1 %v657_v16 }
  0x1c   : > { %635 = vmatprep.subr.bf16.mxu1 %v667_v1 }
  0x1f   : > { %636 = vmatpush3.bf16.msra.mxu1 %v658_v17 }
  0xd4   : > { %v290_v19 = vpop.f32.mrf.mxu0 }
  0xd5   : > { %v296_v21 = vadd.f32 %v573_v18, %v290_v19 }
  0xd6   : > { %v615_v20 = vpop.f32.mrf.mxu0 }
  0xd8   : > { %v293_v22 = vpop.f32.mrf.mxu0 }
  0xda   : > { %v616_v23 = vpop.f32.mrf.mxu0  ;;  %v359_v24 = vpop.f32.mrf.mxu1 }
  0xdb   : > { %v365_v25 = vadd.f32 %v359_v24, %v296_v21 }
  0xdc   : > { %v623_v26 = vpop.f32.mrf.mxu1 }
  0xdd   : > { %v366_v27 = vmax.f32 %v365_v25, 0.0 }
  0xde   : > { %v362_v28 = vpop.f32.mrf.mxu1 }
  0xdf   : > { %v368_v29 = vrot.slane %v366_v27, 7 }
  0xe0   : > { %v624_v30 = vpop.f32.mrf.mxu1 }
  0xe1   : > { %v370_v31 = vsel %vm225_vm1, 0.0, %v368_v29 }
  0xe2   : > { %v383_v32 = vpack.c.bf16 %v370_v31, %v370_v31  ;;  %v445_v33 = vpack.c.bf16 %v368_v29, %v370_v31 }
  0xe4   : > { %v449_v34 = vshll.u32 %v445_v33, 16  ;;  %630 = vmatmul.mubr.msk.bf16.vlgmr.msra.gmra.mxu0 %vm252_vm2, %v383_v32  ;;  %v447_v35 = vshrl.u32 %v445_v33, 16 }
  0xe6   : > { %v451_v36 = vrot.slane %v449_v34, 1 }
  0xe8   : > { %v452_v37 = vor.u32 %v451_v36, %v447_v35 }
  0xea   : > { %638 = vmatmul.mubr.msk.bf16.vlgmr.msra.gmra.mxu1 %vm252_vm2, %v452_v37 }
 0x1a4   : > { %v433_v38 = vpop.f32.mrf.mxu0 }
 0x1a5   : > { %v439_v42 = vadd.f32 %v584_v39, %v433_v38 }
 0x1a6   : > { %v631_v40 = vpop.f32.mrf.mxu0 }
 0x1a8   : > { %v436_v41 = vpop.f32.mrf.mxu0 }
 0x1aa   : > { %v632_v43 = vpop.f32.mrf.mxu0  ;;  %v502_v44 = vpop.f32.mrf.mxu1 }
 0x1ab   : > { %v508_v45 = vadd.f32 %v502_v44, %v439_v42 }
 0x1ac   : > { %v639_v46 = vpop.f32.mrf.mxu1 }
 0x1ad   : > { %v509_v47 = vmax.f32 %v508_v45, 0.0 }
 0x1ae   : > { %v505_v48 = vpop.f32.mrf.mxu1 }
 0x1af   : > { %v510_v49 = vadd.f32 %v509_v47, %v221_v5 }
 0x1b0   : > { %v640_v50 = vpop.f32.mrf.mxu1 }
 0x1b1   : > { %v511_v51 = vmax.f32 %v510_v49, 0.0 }
 0x1b3   : > { %512 = vst.msk [vmem:[%s219_s23] sm:$0xff] %vm252_vm2, %v511_v51 }
 0x1b4 PF: > { %s15_s18 = sadd.s32 1, %s665_s18  }
 0x1b5   : > { %p12_p4 = scmp.ge.s32.totalorder %s15_s18, 4  }
 0x1b7   :  { %14 = sbr.rel (!%p12_p4) target bundleno = 1 (0x1), region = 72 }

// kernel: lskt_forward.8
= control target key start
LH: loop header
LB: loop body
LE: loop exit
PB: predicated region body
PF: predicated region fallthrough
CT: control target
= control target key end

     0   :  { %s689_s18 = smov 0   ;;  %s754_s0 = inlined_call_operand.vmem [shape: f32[2,8,32], index: 0, kind: input, shape index: {}]   ;;  %s755_s1 = inlined_call_operand.vmem [shape: bf16[2,32,32], index: 1, kind: input, shape index: {}]   ;;  %s756_s2 = inlined_call_operand.vmem [shape: f32[1,32], index: 2, kind: input, shape index: {}]   ;;  %s757_s3 = inlined_call_operand.vmem [shape: bf16[2,32,32], index: 3, kind: input, shape index: {}]   ;;  %s758_s4 = inlined_call_operand.vmem [shape: f32[1,32], index: 4, kind: input, shape index: {}]   ;;  %s759_s5 = inlined_call_operand.vmem [shape: f32[2,8,32], index: 5, kind: output, shape index: {}]  }
   0x1 LB: > { %s556_s19 = sadd.s32 4294967295, %s655_s18   ;;  %p560_p0 = scmp.ge.s32.totalorder %s655_s18, 1  ;;  %s655_s18 = sphi %s689_s18, %s15_s18  }
   0x2   : > { %p186_p1 = scmp.lt.s32.totalorder %s655_s18, 3 }
   0x4   : > { %p187_p2 = pnand %p560_p0, %p186_p1 }
   0x5   : > { %p212_p3 = scmp.lt.s32.totalorder (!%p187_p2), %s556_s19, 1 }
   0x6   : > { %190 = sbr.rel (%p187_p2) target bundleno = 428 (0x1ac), region = 40 }
   0xb   : > { %v641_v0 = vld [vmem:[%s755_s1 + $0x8] sm:$0xff]   ;;  %v657_v1 = vmov 0.0   ;;  %v642_v2 = vld [vmem:[%s755_s1 + $0x18] sm:$0xff]   ;;  %v643_v3 = vld [vmem:[%s755_s1] sm:$0xff]   ;;  %vm658_vm0 = vmmov 0   ;;  %s761_s19 = smov (!%p212_p3, %s556_s19), 1 }
   0xc   : > { %599 = vmatprep.subr.bf16.mxu0 %v657_v1  ;;  %607 = vmatprep.subr.bf16.mxu1 %v657_v1  ;;  %v644_v4 = vld [vmem:[%s755_s1 + $0x10] sm:$0xff]   ;;  %s561_s28 = sshll.u32 %s761_s19, 3  ;;  %vm225_vm1 = vcmask 1041408   ;;  %vm252_vm2 = vcmask 261120   ;;  %v645_v11 = vld [vmem:[%s757_s3 + $0x8] sm:$0xff]   ;;  %v646_v12 = vld [vmem:[%s757_s3 + $0x18] sm:$0xff]  }
   0xd   : > { %600 = vmatpush3.bf16.msra.mxu0 %v641_v0  ;;  %603 = vmatprep.mubr.msk.bf16.mxu0 %vm658_vm0, %v657_v1  ;;  %s215_s6 = scalar_lea.vmem %s754_s0, %s561_s28  ;;  %v647_v13 = vld [vmem:[%s757_s3] sm:$0xff]   ;;  %v648_v14 = vld [vmem:[%s757_s3 + $0x10] sm:$0xff]   ;;  %s219_s23 = scalar_lea.vmem %s759_s5, %s561_s28 }
   0xe   : > { %608 = vmatpush3.bf16.msra.mxu1 %v642_v2  ;;  %601 = vmatprep.subr.bf16.mxu0 %v657_v1  ;;  %v221_v5 = vld [vmem:[%s215_s6] sm:$0xff] }
   0xf   : > { %609 = vmatprep.subr.bf16.mxu1 %v657_v1  ;;  %611 = vmatprep.mubr.msk.bf16.mxu1 %vm658_vm0, %v657_v1  ;;  %v223_v6 = vrot.slane %v221_v5, 6  ;;  %v563_v15 = vld [vmem:[%s756_s2] ss:$0 sm:$0xff] }
  0x10   : > { %v574_v32 = vld [vmem:[%s758_s4] ss:$0 sm:$0xff] }
  0x11   : > { %602 = vmatpush3.bf16.msra.mxu0 %v643_v3  ;;  %v226_v7 = vsel %vm225_vm1, 0.0, %v223_v6 }
  0x12   : > { %610 = vmatpush3.bf16.msra.mxu1 %v644_v4  ;;  %615 = vmatprep.subr.bf16.mxu0 %v657_v1  ;;  %v239_v8 = vpack.c.bf16 %v226_v7, %v226_v7  ;;  %v302_v9 = vpack.c.bf16 %v223_v6, %v226_v7 }
  0x13   : > { %623 = vmatprep.subr.bf16.mxu1 %v657_v1 }
  0x14   : > { %604 = vmatmul.mubr.msk.bf16.vlgmr.msra.gmra.mxu0 %vm252_vm2, %v239_v8  ;;  %v304_v10 = vrot.slane %v302_v9, 1 }
  0x15   : > { %619 = vmatprep.mubr.msk.bf16.mxu0 %vm658_vm0, %v657_v1  ;;  %616 = vmatpush3.bf16.msra.mxu0 %v645_v11 }
  0x16   : > { %612 = vmatmul.mubr.msk.bf16.vlgmr.msra.gmra.mxu1 %vm252_vm2, %v304_v10  ;;  %617 = vmatprep.subr.bf16.mxu0 %v657_v1 }
  0x17   : > { %627 = vmatprep.mubr.msk.bf16.mxu1 %vm658_vm0, %v657_v1  ;;  %624 = vmatpush3.bf16.msra.mxu1 %v646_v12 }
  0x18   : > { %625 = vmatprep.subr.bf16.mxu1 %v657_v1 }
  0x19   : > { %618 = vmatpush3.bf16.msra.mxu0 %v647_v13 }
  0x1b   : > { %626 = vmatpush3.bf16.msra.mxu1 %v648_v14 }
  0xd4   : > { %v290_v16 = vpop.f32.mrf.mxu0 }
  0xd5   : > { %v296_v17 = vadd.f32 %v563_v15, %v290_v16 }
  0xd6   : > { %v605_v18 = vpop.f32.mrf.mxu0  ;;  %v354_v19 = vpop.f32.mrf.mxu1 }
  0xd7   : > { %v360_v20 = vadd.f32 %v354_v19, %v296_v17 }
  0xd8   : > { %v293_v21 = vpop.f32.mrf.mxu0  ;;  %v613_v22 = vpop.f32.mrf.mxu1 }
  0xd9   : > { %v361_v23 = vmax.f32 %v360_v20, 0.0 }
  0xda   : > { %v606_v24 = vpop.f32.mrf.mxu0  ;;  %v357_v25 = vpop.f32.mrf.mxu1 }
  0xdb   : > { %v363_v26 = vrot.slane %v361_v23, 6 }
  0xdc   : > { %v614_v27 = vpop.f32.mrf.mxu1 }
  0xdd   : > { %v365_v28 = vsel %vm225_vm1, 0.0, %v363_v26 }
  0xde   : > { %v378_v29 = vpack.c.bf16 %v365_v28, %v365_v28  ;;  %v440_v30 = vpack.c.bf16 %v363_v26, %v365_v28 }
  0xe0   : > { %v442_v31 = vrot.slane %v440_v30, 1  ;;  %620 = vmatmul.mubr.msk.bf16.vlgmr.msra.gmra.mxu0 %vm252_vm2, %v378_v29 }
  0xe2   : > { %628 = vmatmul.mubr.msk.bf16.vlgmr.msra.gmra.mxu1 %vm252_vm2, %v442_v31 }
 0x1a0   : > { %v428_v33 = vpop.f32.mrf.mxu0 }
 0x1a1   : > { %v434_v34 = vadd.f32 %v574_v32, %v428_v33 }
 0x1a2   : > { %v621_v35 = vpop.f32.mrf.mxu0  ;;  %v492_v36 = vpop.f32.mrf.mxu1 }
 0x1a3   : > { %v498_v37 = vadd.f32 %v492_v36, %v434_v34 }
 0x1a4   : > { %v431_v38 = vpop.f32.mrf.mxu0  ;;  %v629_v39 = vpop.f32.mrf.mxu1 }
 0x1a5   : > { %v499_v40 = vmax.f32 %v498_v37, 0.0 }
 0x1a6   : > { %v622_v41 = vpop.f32.mrf.mxu0  ;;  %v495_v42 = vpop.f32.mrf.mxu1 }
 0x1a7   : > { %v500_v43 = vadd.f32 %v499_v40, %v221_v5 }
 0x1a8   : > { %v630_v44 = vpop.f32.mrf.mxu1 }
 0x1a9   : > { %v501_v45 = vmax.f32 %v500_v43, 0.0 }
 0x1ab   : > { %502 = vst.msk [vmem:[%s219_s23] sm:$0xff] %vm252_vm2, %v501_v45 }
 0x1ac PF: > { %s15_s18 = sadd.s32 1, %s655_s18  }
 0x1ad   : > { %p12_p4 = scmp.ge.s32.totalorder %s15_s18, 4  }
 0x1af   :  { %14 = sbr.rel (!%p12_p4) target bundleno = 1 (0x1), region = 72 }

// kernel: lskt_forward.5
= control target key start
LH: loop header
LB: loop body
LE: loop exit
PB: predicated region body
PF: predicated region fallthrough
CT: control target
= control target key end

     0   :  { %s2187_s13 = smov 0   ;;  %s2189_s14 = smov 0   ;;  %s2436_s0 = inlined_call_operand.vmem [shape: f32[2,2,8,32], index: 0, kind: input, shape index: {}]   ;;  %s2437_s1 = inlined_call_operand.vmem [shape: f32[2,2,8,32], index: 1, kind: input, shape index: {}]   ;;  %s2438_s2 = inlined_call_operand.vmem [shape: bf16[2,32,32], index: 2, kind: input, shape index: {}]   ;;  %s2439_s3 = inlined_call_operand.vmem [shape: f32[2,1,32], index: 3, kind: input, shape index: {}]   ;;  %s2440_s4 = inlined_call_operand.vmem [shape: bf16[2,32,32], index: 4, kind: input, shape index: {}]   ;;  %s2441_s5 = inlined_call_operand.vmem [shape: f32[2,1,32], index: 5, kind: input, shape index: {}]   ;;  %s2442_s6 = inlined_call_operand.vmem [shape: bf16[2,32,32], index: 6, kind: input, shape index: {}]   ;;  %s2443_s7 = inlined_call_operand.vmem [shape: f32[2,1,32], index: 7, kind: input, shape index: {}]   ;;  %s2444_s8 = inlined_call_operand.vmem [shape: f32[2,1,32], index: 8, kind: input, shape index: {}]   ;;  %s2445_s9 = inlined_call_operand.vmem [shape: f32[2,1,32], index: 9, kind: input, shape index: {}]   ;;  %s2446_s10 = inlined_call_operand.vmem [shape: f32[2,2,8,32], index: 10, kind: output, shape index: {}]  }
   0x1   :  { %s2191_s15 = smov 0   ;;  %s2193_s16 = smov 0  }
   0x2   :  { %s2195_s17 = smov 0  }
   0x3 LB: > { %s29_s18 = sadd.s32 1, %s2111_s15  ;;  %s32_s19 = sadd.s32 1, %s2115_s16  ;;  %s2119_s17 = sphi %s2195_s17, %s20_s17   ;;  %s2115_s16 = sphi %s2193_s16, %s2450_s16   ;;  %s2111_s15 = sphi %s2191_s15, %s2449_s15   ;;  %s2107_s14 = sphi %s2189_s14, %s2448_s14   ;;  %s2103_s13 = sphi %s2187_s13, %s2447_s13  }
   0x4   : > { %p30_p0 = scmp.ge.s32.totalorder %s29_s18, 2  ;;  %p1863_p1 = scmp.ge.s32.totalorder %s2119_s17, 1 }
   0x5   : > { %p416_p2 = scmp.lt.s32.totalorder %s2119_s17, 5 }
   0x6   : > { %s2452_s18 = smov (%p30_p0, %s29_s18), 0  ;;  %s2454_s19 = smov (!%p30_p0, %s32_s19), %s2115_s16 }
   0x7   : > { %p417_p3 = pnand %p1863_p1, %p416_p2  ;;  %p34_p4 = scmp.ge.s32.totalorder %s2454_s19, 2 }
   0x8   : > { %p498_p5 = scmp.lt.s32.totalorder (!%p417_p3), %s2107_s14, 1  ;;  %p500_p6 = scmp.lt.s32.totalorder (!%p417_p3), %s2103_s13, 1 }
   0x9   : > { %s2456_s19 = smov (%p34_p4, %s2454_s19), 0  ;;  %420 = sbr.rel (%p417_p3) target bundleno = 1769 (0x6e9), region = 60 }
   0xa   : > { %s2123_s26 = smov (!%p417_p3), 104   ;;  %s2124_s27 = smov (!%p417_p3), 120  }
   0xb   : > { %s2130_s23 = smov (!%p417_p3), 8  }
   0xe   : > { %v2121_v0 = vmov 0.0   ;;  %vm2122_vm0 = vmmov 0   ;;  %s2458_s14 = smov (!%p498_p5, %s2107_s14), 1  ;;  %s2460_s13 = smov (!%p500_p6, %s2103_s13), 1  ;;  %vm579_vm1 = vcmask 261120   ;;  %v705_v17 = vlaneseq }
   0xf   : > { %1934 = vmatprep.subr.bf16.mxu0 %v2121_v0  ;;  %1938 = vmatprep.mubr.msk.bf16.mxu0 %vm2122_vm0, %v2121_v0  ;;  %s1906_s20 = sshll.u32 %s2458_s14, 4  ;;  %s1864_s21 = sshll.u32 %s2458_s14, 1  ;;  %v2126_v15 = vmov 1983009808   ;;  %v2127_v18 = vmov 1934713408  }
  0x10   : > { %1942 = vmatprep.subr.bf16.mxu1 %v2121_v0  ;;  %1946 = vmatprep.mubr.msk.bf16.mxu1 %vm2122_vm0, %v2121_v0  ;;  %s518_s24 = scalar_lea.vmem %s2438_s2, %s1906_s20  ;;  %s503_s25 = sadd.s32 %s1864_s21, %s2460_s13  ;;  %v703_v16 = vunpack.c.l.s4 %v2126_v15  ;;  %v735_v19 = vunpack.c.l.s4 %v2127_v18  ;;  %v2270_v21 = vshrl.u32 %v705_v17, 7  ;;  %vm1000_vm2 = vcmask 64512  }
  0x11   : > { %v2057_v1 = vld [vmem:[%s518_s24 + $0x8] sm:$0xff]   ;;  %s2233_s28 = scalar_lea.vmem %s2442_s6, %s1906_s20  ;;  %s2235_s29 = sshll.u32 %s503_s25, 3  ;;  %v2058_v2 = vld [vmem:[%s518_s24] sm:$0xff]   ;;  %vm1240_vm4 = vcmask 1043456   ;;  %vm1571_vm5 = vcmask 130048   ;;  %vm1573_vm6 = vcmask 195584  }
  0x12   : > { %1935 = vmatpush3.bf16.msra.mxu0 %v2057_v1  ;;  %s505_s12 = scalar_lea.vmem %s2436_s0, %s2235_s29  ;;  %s521_s22 = scalar_lea.vmem %s2439_s3, %s2458_s14  ;;  %v704_v20 = vunpack.c.0.s8 %v703_v16  ;;  %v736_v24 = vunpack.c.0.s8 %v735_v19 }
  0x13   : > { %1936 = vmatprep.subr.bf16.mxu0 %v2121_v0  ;;  %v2242_v3 = vld [vmem:[%s505_s12] sm:$0xff]  ;;  %s526_s25 = scalar_lea.vmem %s2440_s4, %s1906_s20  ;;  %s513_s12 = scalar_lea.vmem %s2437_s1, %s2235_s29 }
  0x14   : > { %v559_v4 = vpack.c.bf16 %v2242_v3, %v2242_v3  ;;  %v1876_v5 = vld [vmem:[%s521_s22] ss:$0 sm:$0xff]  ;;  %v2059_v6 = vld [vmem:[%s526_s25 + $0x8] sm:$0xff]   ;;  %s2125_s20 = smov 112   ;;  %v2273_v25 = vsub.s32 %v704_v20, %v2270_v21  ;;  %v2276_v31 = vsub.s32 %v736_v24, %v2270_v21  ;;  %v997_v24 = vand.u32 127, %v705_v17  ;;  %s529_s22 = scalar_lea.vmem %s2441_s5, %s2458_s14 }
  0x15   : > { %1943 = vmatpush3.bf16.msra.mxu1 %v2059_v6  ;;  %v2060_v10 = vld [vmem:[%s526_s25] sm:$0xff]   ;;  %s2131_s24 = smov 24   ;;  %s543_s21 = scalar_lea.vmem %s2445_s9, %s2458_s14 }
  0x16   : > { %1937 = vmatpush3.bf16.msra.mxu0 %v2058_v2  ;;  %1944 = vmatprep.subr.bf16.mxu1 %v2121_v0  ;;  %v554_v12 = vld [vmem:[%s513_s12] sm:$0xff]  ;;  %vm998_vm3 = vcmp.le.s32.totalorder %v997_v24, %v2270_v21  ;;  %s540_s12 = scalar_lea.vmem %s2444_s8, %s2458_s14 }
  0x17   : > { %1950 = vmatprep.subr.bf16.mxu0 %v2121_v0  ;;  %v627_v14 = vpack.c.bf16 %v554_v12, %v554_v12 }
  0x19   : > { %1939 = vmatmul.mubr.msk.bf16.vlgmr.msra.gmra.mxu0 %vm579_vm1, %v559_v4  ;;  %1945 = vmatpush3.bf16.msra.mxu1 %v2060_v10 }
  0x1a   : > { %1952 = vmatprep.mubr.msk.bf16.mxu0 %vm2122_vm0, %v2121_v0  ;;  %1956 = vmatprep.subr.bf16.mxu1 %v2121_v0 }
  0x1c   : > { %1947 = vmatmul.mubr.msk.bf16.vlgmr.msra.gmra.mxu1 %vm579_vm1, %v627_v14 }
  0x1d   : > { %1958 = vmatprep.mubr.msk.bf16.mxu1 %vm2122_vm0, %v2121_v0 }
  0xd9   : > { %v617_v7 = vpop.f32.mrf.mxu0 }
  0xda   : > { %v618_v8 = vadd.f32 %v1876_v5, %v617_v7 }
  0xdb   : > { %v1940_v9 = vpop.f32.mrf.mxu0 }
  0xdc   : > { %697 = vrot.lane.b32.xlu1 %v618_v8, %s2123_s26  ;;  %691 = vrot.lane.b32.xlu0 %v618_v8, %s2124_s27  ;;  %v684_v19 = vpop.f32.mrf.mxu1 }
  0xdd   : > { %v620_v11 = vpop.f32.mrf.mxu0 }
  0xde   : > { %v1948_v20 = vpop.f32.mrf.mxu1 }
  0xdf   : > { %v1941_v13 = vpop.f32.mrf.mxu0 }
  0xe0   : > { %694 = vrot.lane.b32.xlu0 %v618_v8, %s2125_s20 }
 0x14e   : > { %v698_v22 = vpop.permute.xlu1 %697  ;;  %v692_v23 = vpop.permute.xlu0 %691 }
 0x14f   : > { %v716_v26 = vcombine.low %v692_v23, %v698_v22  ;;  %v717_v27 = vcombine.high %v692_v23, %v698_v22  ;;  %v687_v22 = vpop.f32.mrf.mxu1 }
 0x151   : > { %v724_v32 = vrot.slane %v716_v26, %v2273_v25  ;;  %v731_v33 = vrot.slane %v717_v27, %v2273_v25  ;;  %v1949_v23 = vpop.f32.mrf.mxu1  ;;  %v2128_v26 = vmov -1e+30  }
 0x152   : > { %v695_v28 = vpop.permute.xlu0 %694  ;;  %v999_v27 = vsel %vm998_vm3, 0.0, %v2128_v26 }
 0x153   : > { %v700_v29 = vcombine.low %v618_v8, %v695_v28  ;;  %v701_v30 = vcombine.high %v618_v8, %v695_v28 }
 0x155   : > { %v708_v34 = vrot.slane %v700_v29, %v2273_v25  ;;  %v715_v35 = vrot.slane %v701_v30, %v2273_v25 }
 0x157   : > { %v732_v36 = vcombine.low %v708_v34, %v724_v32  ;;  %v733_v37 = vcombine.high %v708_v34, %v724_v32  ;;  %v748_v38 = vcombine.low %v715_v35, %v731_v33  ;;  %v749_v39 = vcombine.high %v715_v35, %v731_v33 }
 0x159   : > { %v740_v40 = vrot.slane %v732_v36, %v2276_v31  ;;  %v747_v41 = vrot.slane %v733_v37, %v2276_v31  ;;  %v756_v42 = vrot.slane %v748_v38, %v2276_v31  ;;  %v763_v43 = vrot.slane %v749_v39, %v2276_v31 }
 0x15b   : > { %v768_v44 = vcombine.low %v740_v40, %v747_v41  ;;  %v1884_v45 = vcombine.high %v740_v40, %v747_v41  ;;  %v784_v46 = vcombine.low %v756_v42, %v763_v43  ;;  %v1885_v47 = vcombine.high %v756_v42, %v763_v43 }
 0x15d   : > { %v775_v48 = vrot.slane %v768_v44, %v2273_v25  ;;  %v783_v49 = vrot.slane %v1884_v45, %v2273_v25  ;;  %v791_v50 = vrot.slane %v784_v46, %v2273_v25  ;;  %v799_v51 = vrot.slane %v1885_v47, %v2273_v25 }
 0x15f   : > { %v800_v52 = vcombine.low %v775_v48, %v783_v49  ;;  %v816_v53 = vcombine.low %v791_v50, %v799_v51  ;;  %v801_v54 = vcombine.high %v775_v48, %v783_v49  ;;  %v817_v55 = vcombine.high %v791_v50, %v799_v51  ;;  %v1880_v51 = vld [vmem:[%s529_s22] ss:$0 sm:$0xff] }
 0x161   : > { %v808_v56 = vrot.slane %v800_v52, %v2276_v31  ;;  %v824_v57 = vrot.slane %v816_v53, %v2276_v31  ;;  %v815_v60 = vrot.slane %v801_v54, %v2276_v31  ;;  %v831_v61 = vrot.slane %v817_v55, %v2276_v31 }
 0x162   : > { %v685_v52 = vadd.f32 %v1880_v51, %v684_v19 }
 0x163   : > { %v832_v58 = vcombine.low %v808_v56, %v824_v57  ;;  %v833_v59 = vcombine.high %v808_v56, %v824_v57  ;;  %v834_v4 = vcombine.low %v815_v60, %v831_v61  ;;  %v835_v5 = vcombine.high %v815_v60, %v831_v61 }
 0x165   : > { %v990_v62 = vpack.c.bf16 %v832_v58, %v832_v58  ;;  %v991_v63 = vpack.c.bf16 %v833_v59, %v833_v59  ;;  %v982_v6 = vmul.f32 0.35355338, %v832_v58  ;;  %v983_v7 = vmul.f32 0.35355338, %v833_v59 }
 0x166   : > { %v992_v8 = vpack.c.bf16 %v834_v4, %v834_v4  ;;  %v993_v9 = vpack.c.bf16 %v835_v5, %v835_v5  ;;  %v984_v14 = vmul.f32 0.35355338, %v834_v4  ;;  %v985_v15 = vmul.f32 0.35355338, %v835_v5 }
 0x167   : > { %v1005_v1 = vsel %vm1000_vm2, %v990_v62, 0  ;;  %v1051_v2 = vsel %vm1000_vm2, %v991_v63, 0  ;;  %v986_v10 = vpack.c.bf16 %v982_v6, %v982_v6  ;;  %v987_v11 = vpack.c.bf16 %v983_v7, %v983_v7 }
 0x168   : > { %1951 = vmatpush3.bf16.xpose.msra.mxu0 %v1005_v1  ;;  %1957 = vmatpush3.bf16.xpose.msra.mxu1 %v1051_v2  ;;  %v1097_v12 = vsel %vm1000_vm2, %v992_v8, 0  ;;  %v1143_v13 = vsel %vm1000_vm2, %v993_v9, 0  ;;  %v988_v16 = vpack.c.bf16 %v984_v14, %v984_v14  ;;  %v989_v18 = vpack.c.bf16 %v985_v15, %v985_v15 }
 0x169   : > { %1962 = vmatprep.subr.bf16.mxu0 %v2121_v0  ;;  %1968 = vmatprep.subr.bf16.mxu1 %v2121_v0 }
 0x16f   : > { %1953 = vmatmul.mubr.msk.bf16.vlgmr.msra.gmra.mxu0 %vm1000_vm2, %v986_v10  ;;  %1959 = vmatmul.mubr.msk.bf16.vlgmr.msra.gmra.mxu1 %vm1000_vm2, %v987_v11 }
 0x170   : > { %1963 = vmatpush3.bf16.xpose.msra.mxu0 %v1097_v12  ;;  %1969 = vmatpush3.bf16.xpose.msra.mxu1 %v1143_v13 }
 0x171   : > { %1964 = vmatprep.mubr.msk.bf16.mxu0 %vm2122_vm0, %v2121_v0  ;;  %1970 = vmatprep.mubr.msk.bf16.mxu1 %vm2122_vm0, %v2121_v0 }
 0x172   : > { %1974 = vmatprep.subr.bf16.mxu0 %v2121_v0  ;;  %1980 = vmatprep.subr.bf16.mxu1 %v2121_v0 }
 0x177   : > { %1965 = vmatmul.mubr.msk.bf16.vlgmr.msra.gmra.mxu0 %vm1000_vm2, %v988_v16  ;;  %1971 = vmatmul.mubr.msk.bf16.vlgmr.msra.gmra.mxu1 %vm1000_vm2, %v989_v18 }
 0x178   : > { %1976 = vmatprep.mubr.msk.bf16.mxu0 %vm2122_vm0, %v2121_v0  ;;  %1982 = vmatprep.mubr.msk.bf16.mxu1 %vm2122_vm0, %v2121_v0 }
 0x22f   : > { %v1041_v28 = vpop.f32.mrf.mxu0  ;;  %v1087_v29 = vpop.f32.mrf.mxu1 }
 0x230   : > { %v1042_v30 = vadd.f32 %v1041_v28, %v999_v27  ;;  %v1088_v32 = vadd.f32 %v1087_v29, %v999_v27 }
 0x231   : > { %v1954_v33 = vpop.f32.mrf.mxu0  ;;  %v1960_v34 = vpop.f32.mrf.mxu1 }
 0x232   : > { %v1188_v35 = vsel %vm1000_vm2, %v1088_v32, -inf  ;;  %v1185_v36 = vsel %vm1000_vm2, %v1042_v30, -inf }
 0x233   : > { %1189 = vmax.xlane.f32.xlu0 %v1188_v35  ;;  %v1090_v37 = vpop.f32.mrf.mxu1  ;;  %1186 = vmax.xlane.f32.xlu1 %v1185_v36  ;;  %v1044_v38 = vpop.f32.mrf.mxu0 }
 0x235   : > { %v1955_v39 = vpop.f32.mrf.mxu0  ;;  %v1961_v17 = vpop.f32.mrf.mxu1 }
 0x237   : > { %v1133_v21 = vpop.f32.mrf.mxu0  ;;  %v1179_v40 = vpop.f32.mrf.mxu1 }
 0x238   : > { %v1134_v41 = vadd.f32 %v1133_v21, %v999_v27  ;;  %v1180_v42 = vadd.f32 %v1179_v40, %v999_v27 }
 0x239   : > { %v1966_v43 = vpop.f32.mrf.mxu0  ;;  %v1972_v44 = vpop.f32.mrf.mxu1 }
 0x23a   : > { %v1194_v45 = vsel %vm1000_vm2, %v1180_v42, -inf  ;;  %v1191_v46 = vsel %vm1000_vm2, %v1134_v41, -inf }
 0x23b   : > { %v1182_v47 = vpop.f32.mrf.mxu1  ;;  %1195 = vmax.xlane.f32.xlu1 %v1194_v45  ;;  %1192 = vmax.xlane.f32.xlu0 %v1191_v46  ;;  %v1136_v48 = vpop.f32.mrf.mxu0 }
 0x23d   : > { %v1967_v49 = vpop.f32.mrf.mxu0  ;;  %v1973_v50 = vpop.f32.mrf.mxu1 }
 0x24c   : > { %840 = vrot.lane.b32.xlu1 %v685_v52, %s2125_s20 }
 0x2bc   : > { %v1190_v53 = vpop.xlane.xlu0 %1189  ;;  %v1187_v54 = vpop.xlane.xlu1 %1186 }
 0x2bd   : > { %v1198_v55 = vsub.f32 %v1088_v32, %v1190_v53  ;;  %v1197_v56 = vsub.f32 %v1042_v30, %v1187_v54 }
 0x2bf   : > { %v1203_v57 = vmul.f32 1.442695, %v1198_v55  ;;  %v1201_v58 = vmul.f32 1.442695, %v1197_v56 }
 0x2c1   : > { %2063 = vpow2.f32 %v1203_v57 }
 0x2c2   : > { %2065 = vpow2.f32 %v1201_v58 }
 0x2c4   : > { %v1196_v63 = vpop.xlane.xlu1 %1195  ;;  %v1193_v1 = vpop.xlane.xlu0 %1192 }
 0x2c5   : > { %v1200_v2 = vsub.f32 %v1180_v42, %v1196_v63  ;;  %v1199_v4 = vsub.f32 %v1134_v41, %v1193_v1 }
 0x2c7   : > { %v1207_v5 = vmul.f32 1.442695, %v1200_v2  ;;  %v1205_v6 = vmul.f32 1.442695, %v1199_v4 }
 0x2c8   : > { %v841_v11 = vpop.permute.xlu1 %840 }
 0x2c9   : > { %2067 = vpow2.f32 %v1207_v5  ;;  %v846_v14 = vcombine.low %v685_v52, %v841_v11  ;;  %v847_v15 = vcombine.high %v685_v52, %v841_v11 }
 0x2ca   : > { %2069 = vpow2.f32 %v1205_v6 }
 0x2cb   : > { %v854_v22 = vrot.slane %v846_v14, %v2273_v25  ;;  %v861_v23 = vrot.slane %v847_v15, %v2273_v25 }
 0x2ce   : > { %v2325_v59 = vpop.eup %2063 }
 0x2cf   : > { %v2327_v60 = vpop.eup %2065  ;;  %v1212_v61 = vsel %vm1000_vm2, %v2325_v59, 0.0 }
 0x2d0   : > { %1213 = vadd.xlane.f32.xlu1 %v1212_v61  ;;  %v1209_v62 = vsel %vm1000_vm2, %v2327_v60, 0.0 }
 0x2d1   : > { %1210 = vadd.xlane.f32.xlu0 %v1209_v62 }
 0x2d6   : > { %v2335_v7 = vpop.eup %2067 }
 0x2d7   : > { %v2337_v8 = vpop.eup %2069  ;;  %v1218_v9 = vsel %vm1000_vm2, %v2335_v7, 0.0 }
 0x2d8   : > { %v1215_v10 = vsel %vm1000_vm2, %v2337_v8, 0.0 }
 0x2e1   : > { %843 = vrot.lane.b32.xlu1 %v685_v52, %s2123_s26 }
 0x2e7   : > { %837 = vrot.lane.b32.xlu0 %v685_v52, %s2124_s27  ;;  %s537_s27 = scalar_lea.vmem %s2443_s7, %s2458_s14 }
 0x305   : > { %1219 = vadd.xlane.f32.xlu1 %v1218_v9 }
 0x306   : > { %1216 = vadd.xlane.f32.xlu0 %v1215_v10 }
 0x359   : > { %v1214_v12 = vpop.xlane.xlu1 %1213 }
 0x35a   : > { %v1211_v13 = vpop.xlane.xlu0 %1210  ;;  %2071 = vrcp.f32 %v1214_v12 }
 0x35b   : > { %2073 = vrcp.f32 %v1211_v13 }
 0x35d   : > { %v844_v16 = vpop.permute.xlu1 %843 }
 0x35e   : > { %v838_v18 = vpop.permute.xlu0 %837 }
 0x35f   : > { %v862_v19 = vcombine.low %v838_v18, %v844_v16  ;;  %v863_v20 = vcombine.high %v838_v18, %v844_v16 }
 0x361   : > { %v870_v24 = vrot.slane %v862_v19, %v2273_v25  ;;  %v877_v26 = vrot.slane %v863_v20, %v2273_v25 }
 0x363   : > { %v878_v27 = vcombine.low %v854_v22, %v870_v24  ;;  %v879_v28 = vcombine.high %v854_v22, %v870_v24  ;;  %v894_v29 = vcombine.low %v861_v23, %v877_v26  ;;  %v895_v30 = vcombine.high %v861_v23, %v877_v26 }
 0x365   : > { %v886_v32 = vrot.slane %v878_v27, %v2276_v31  ;;  %v893_v33 = vrot.slane %v879_v28, %v2276_v31  ;;  %v902_v34 = vrot.slane %v894_v29, %v2276_v31  ;;  %v909_v35 = vrot.slane %v895_v30, %v2276_v31 }
 0x367   : > { %v914_v36 = vcombine.low %v886_v32, %v893_v33  ;;  %v1886_v37 = vcombine.high %v886_v32, %v893_v33  ;;  %v930_v38 = vcombine.low %v902_v34, %v909_v35  ;;  %v1887_v39 = vcombine.high %v902_v34, %v909_v35  ;;  %v2072_v46 = vpop.eup %2071 }
 0x368   : > { %v2074_v51 = vpop.eup %2073  ;;  %v1226_v61 = vmul.f32 %v2072_v46, %v2325_v59 }
 0x369   : > { %v921_v17 = vrot.slane %v914_v36, %v2273_v25  ;;  %v929_v21 = vrot.slane %v1886_v37, %v2273_v25  ;;  %v937_v40 = vrot.slane %v930_v38, %v2273_v25  ;;  %v945_v41 = vrot.slane %v1887_v39, %v2273_v25 }
 0x36a   : > { %v1225_v58 = vmul.f32 %v2074_v51, %v2327_v60  ;;  %v1230_v5 = vpack.c.bf16 %v1226_v61, %v1226_v61 }
 0x36b   : > { %v946_v42 = vcombine.low %v921_v17, %v929_v21  ;;  %v962_v43 = vcombine.low %v937_v40, %v945_v41  ;;  %v947_v44 = vcombine.high %v921_v17, %v929_v21  ;;  %v963_v45 = vcombine.high %v937_v40, %v945_v41 }
 0x36c   : > { %v1229_v4 = vpack.c.bf16 %v1225_v58, %v1225_v58 }
 0x36d   : > { %v954_v47 = vrot.slane %v946_v42, %v2276_v31  ;;  %v970_v48 = vrot.slane %v962_v43, %v2276_v31  ;;  %v961_v49 = vrot.slane %v947_v44, %v2276_v31  ;;  %v977_v50 = vrot.slane %v963_v45, %v2276_v31  ;;  %v2061_v43 = vld [vmem:[%s2233_s28 + $0x8] sm:$0xff]  }
 0x36f   : > { %v978_v52 = vcombine.low %v954_v47, %v970_v48  ;;  %v979_v53 = vcombine.high %v954_v47, %v970_v48  ;;  %v980_v54 = vcombine.low %v961_v49, %v977_v50  ;;  %v981_v55 = vcombine.high %v961_v49, %v977_v50 }
 0x371   : > { %v1233_v56 = vpack.c.bf16 %v978_v52, %v978_v52  ;;  %v1234_v57 = vpack.c.bf16 %v979_v53, %v979_v53  ;;  %v1235_v1 = vpack.c.bf16 %v980_v54, %v980_v54  ;;  %v1236_v2 = vpack.c.bf16 %v981_v55, %v981_v55  ;;  %v2062_v53 = vld [vmem:[%s2233_s28] sm:$0xff]   ;;  %s2129_s28 = smov 16  }
 0x373   : > { %v1242_v62 = vsel %vm1240_vm4, %v1233_v56, 0  ;;  %v1288_v63 = vsel %vm1240_vm4, %v1234_v57, 0  ;;  %v1334_v59 = vsel %vm1240_vm4, %v1235_v1, 0  ;;  %v1380_v60 = vsel %vm1240_vm4, %v1236_v2, 0 }
 0x374   : > { %1975 = vmatpush3.bf16.msra.mxu0 %v1242_v62  ;;  %1981 = vmatpush3.bf16.msra.mxu1 %v1288_v63 }
 0x375   : > { %1986 = vmatprep.subr.bf16.mxu0 %v2121_v0  ;;  %1992 = vmatprep.subr.bf16.mxu1 %v2121_v0 }
 0x377   : > { %1977 = vmatmul.mubr.msk.bf16.vlgmr.msra.gmra.mxu0 %vm1000_vm2, %v1229_v4  ;;  %1983 = vmatmul.mubr.msk.bf16.vlgmr.msra.gmra.mxu1 %vm1000_vm2, %v1230_v5 }
 0x378   : > { %1987 = vmatpush3.bf16.msra.mxu0 %v1334_v59  ;;  %1993 = vmatpush3.bf16.msra.mxu1 %v1380_v60 }
 0x379   : > { %1988 = vmatprep.mubr.msk.bf16.mxu0 %vm2122_vm0, %v2121_v0  ;;  %1994 = vmatprep.mubr.msk.bf16.mxu1 %vm2122_vm0, %v2121_v0 }
 0x37a   : > { %1998 = vmatprep.subr.bf16.mxu0 %v2121_v0 }
 0x38e   : > { %v1220_v6 = vpop.xlane.xlu1 %1219 }
 0x38f   : > { %2075 = vrcp.f32 %v1220_v6  ;;  %v1217_v9 = vpop.xlane.xlu0 %1216 }
 0x390   : > { %2077 = vrcp.f32 %v1217_v9 }
 0x39c   : > { %v2076_v10 = vpop.eup %2075 }
 0x39d   : > { %v2078_v11 = vpop.eup %2077  ;;  %v1228_v12 = vmul.f32 %v2076_v10, %v2335_v7 }
 0x39e   : > { %v1227_v13 = vmul.f32 %v2078_v11, %v2337_v8 }
 0x39f   : > { %v1232_v14 = vpack.c.bf16 %v1228_v12, %v1228_v12 }
 0x3a0   : > { %v1231_v15 = vpack.c.bf16 %v1227_v13, %v1227_v13 }
 0x3a1   : > { %1995 = vmatmul.mubr.msk.bf16.vlgmr.msra.gmra.mxu1 %vm1000_vm2, %v1232_v14  ;;  %v1898_v14 = vld [vmem:[%s537_s27] ss:$0 sm:$0xff] }
 0x3a2   : > { %1989 = vmatmul.mubr.msk.bf16.vlgmr.msra.gmra.mxu0 %vm1000_vm2, %v1231_v15 }
 0x3a3   : > { %2002 = vmatprep.mubr.msk.bf16.mxu0 %vm2122_vm0, %v2121_v0  ;;  %1999 = vmatpush3.bf16.msra.mxu0 %v2061_v43 }
 0x3a4   : > { %2000 = vmatprep.subr.bf16.mxu0 %v2121_v0 }
 0x3a7   : > { %2001 = vmatpush3.bf16.msra.mxu0 %v2062_v53 }
 0x437   : > { %v1278_v16 = vpop.f32.mrf.mxu0  ;;  %v1324_v18 = vpop.f32.mrf.mxu1 }
 0x439   : > { %v1978_v19 = vpop.f32.mrf.mxu0  ;;  %v1984_v20 = vpop.f32.mrf.mxu1 }
 0x43b   : > { %v1281_v22 = vpop.f32.mrf.mxu0  ;;  %v1327_v23 = vpop.f32.mrf.mxu1 }
 0x43d   : > { %v1979_v24 = vpop.f32.mrf.mxu0  ;;  %v1985_v26 = vpop.f32.mrf.mxu1 }
 0x461   : > { %v1416_v7 = vpop.f32.mrf.mxu1 }
 0x462   : > { %v1370_v27 = vpop.f32.mrf.mxu0  ;;  %v1438_v8 = vcombine.low %v1324_v18, %v1416_v7  ;;  %v1439_v28 = vcombine.high %v1324_v18, %v1416_v7 }
 0x463   : > { %v1422_v29 = vcombine.low %v1278_v16, %v1370_v27  ;;  %v1423_v30 = vcombine.high %v1278_v16, %v1370_v27  ;;  %v1996_v32 = vpop.f32.mrf.mxu1 }
 0x464   : > { %v1446_v33 = vrot.slane %v1438_v8, %v2273_v25  ;;  %v1453_v34 = vrot.slane %v1439_v28, %v2273_v25  ;;  %v1990_v35 = vpop.f32.mrf.mxu0  ;;  %v1902_v32 = vld [vmem:[%s540_s12] ss:$0 sm:$0xff] }
 0x465   : > { %v1430_v36 = vrot.slane %v1422_v29, %v2273_v25  ;;  %v1437_v37 = vrot.slane %v1423_v30, %v2273_v25  ;;  %v1419_v38 = vpop.f32.mrf.mxu1 }
 0x466   : > { %v1373_v39 = vpop.f32.mrf.mxu0 }
 0x467   : > { %v1454_v17 = vcombine.low %v1430_v36, %v1446_v33  ;;  %v1455_v21 = vcombine.high %v1430_v36, %v1446_v33  ;;  %v1470_v40 = vcombine.low %v1437_v37, %v1453_v34  ;;  %v1471_v41 = vcombine.high %v1437_v37, %v1453_v34  ;;  %v1997_v42 = vpop.f32.mrf.mxu1  ;;  %v1903_v34 = vld [vmem:[%s543_s21] ss:$0 sm:$0xff] }
 0x468   : > { %v1991_v44 = vpop.f32.mrf.mxu0 }
 0x469   : > { %v1462_v45 = vrot.slane %v1454_v17, %v2276_v31  ;;  %v1469_v46 = vrot.slane %v1455_v21, %v2276_v31  ;;  %v1478_v47 = vrot.slane %v1470_v40, %v2276_v31  ;;  %v1485_v48 = vrot.slane %v1471_v41, %v2276_v31 }
 0x46b   : > { %v1490_v49 = vcombine.low %v1462_v45, %v1469_v46  ;;  %v1896_v50 = vcombine.high %v1462_v45, %v1469_v46  ;;  %v1506_v51 = vcombine.low %v1478_v47, %v1485_v48  ;;  %v1897_v52 = vcombine.high %v1478_v47, %v1485_v48 }
 0x46d   : > { %v1497_v54 = vrot.slane %v1490_v49, %v2273_v25  ;;  %v1505_v55 = vrot.slane %v1896_v50, %v2273_v25  ;;  %v1513_v56 = vrot.slane %v1506_v51, %v2273_v25  ;;  %v1521_v57 = vrot.slane %v1897_v52, %v2273_v25 }
 0x46f   : > { %v1523_v58 = vcombine.high %v1497_v54, %v1505_v55  ;;  %v1539_v61 = vcombine.high %v1513_v56, %v1521_v57  ;;  %v1522_v62 = vcombine.low %v1497_v54, %v1505_v55  ;;  %v1538_v63 = vcombine.low %v1513_v56, %v1521_v57 }
 0x471   : > { %v1537_v0 = vrot.slane %v1523_v58, %v2276_v31  ;;  %v1553_v1 = vrot.slane %v1539_v61, %v2276_v31  ;;  %v1530_v2 = vrot.slane %v1522_v62, %v2276_v31  ;;  %v1546_v4 = vrot.slane %v1538_v63, %v2276_v31 }
 0x473   : > { %v1556_v5 = vcombine.low %v1537_v0, %v1553_v1  ;;  %v1555_v59 = vcombine.high %v1530_v2, %v1546_v4  ;;  %v1554_v60 = vcombine.low %v1530_v2, %v1546_v4  ;;  %v1557_v25 = vcombine.high %v1537_v0, %v1553_v1 }
 0x475   : > { %1563 = vrot.lane.b32.xlu1 %v1556_v5, %s2129_s28  ;;  %1559 = vrot.lane.b32.xlu0 %v1555_v59, %s2130_s23  ;;  %s551_s23 = scalar_lea.vmem %s2446_s10, %s2235_s29 }
 0x479   : > { %1567 = vrot.lane.b32.xlu0 %v1557_v25, %s2131_s24 }
 0x4e7   : > { %v1560_v6 = vpop.permute.xlu0 %1559  ;;  %v1564_v9 = vpop.permute.xlu1 %1563 }
 0x4e8   : > { %v1570_v10 = vsel %vm1000_vm2, %v1554_v60, %v1560_v6 }
 0x4e9   : > { %v1572_v12 = vsel %vm1571_vm5, %v1570_v10, %v1564_v9 }
 0x4eb   : > { %v1568_v11 = vpop.permute.xlu0 %1567 }
 0x4ec   : > { %v1574_v31 = vsel %vm1573_vm6, %v1572_v12, %v1568_v11 }
 0x4ed   : > { %v1579_v13 = vpack.c.bf16 %v1574_v31, %v1574_v31 }
 0x4ef   : > { %2003 = vmatmul.mubr.msk.bf16.vlgmr.msra.gmra.mxu0 %vm579_vm1, %v1579_v13 }
 0x5af   : > { %v1636_v15 = vpop.f32.mrf.mxu0 }
 0x5b0   : > { %v1637_v16 = vadd.f32 %v1898_v14, %v1636_v15 }
 0x5b1   : > { %v2004_v18 = vpop.f32.mrf.mxu0 }
 0x5b2   : > { %v1642_v19 = vadd.f32 %v1637_v16, %v2242_v3 }
 0x5b3   : > { %v1639_v20 = vpop.f32.mrf.mxu0 }
 0x5b4   : > { %v1645_v22 = vsel %vm579_vm1, %v1642_v19, 0.0 }
 0x5b5   : > { %1646 = vadd.xlane.f32.xlu1 %v1645_v22  ;;  %v2005_v23 = vpop.f32.mrf.mxu0 }
 0x63e   : > { %v1647_v24 = vpop.xlane.xlu1 %1646 }
 0x63f   : > { %v1649_v26 = vmul.f32 0.03125, %v1647_v24 }
 0x641   : > { %v1650_v7 = vsub.f32 %v1642_v19, %v1649_v26 }
 0x643   : > { %v1651_v27 = vmul.f32 %v1650_v7, %v1650_v7 }
 0x645   : > { %v1652_v8 = vsel %vm579_vm1, %v1651_v27, 0.0 }
 0x646   : > { %1653 = vadd.xlane.f32.xlu0 %v1652_v8 }
 0x6cf   : > { %v1654_v28 = vpop.xlane.xlu0 %1653 }
 0x6d0   : > { %v1655_v29 = vmul.f32 0.03125, %v1654_v28 }
 0x6d2   : > { %v1656_v30 = vadd.f32 1e-05, %v1655_v29 }
 0x6d4   : > { %2079 = vrsqrt.f32 %v1656_v30 }
 0x6e1   : > { %v2080_v3 = vpop.eup %2079 }
 0x6e2   : > { %v1658_v33 = vmul.f32 %v2080_v3, %v1650_v7 }
 0x6e4   : > { %v1665_v35 = vmul.f32 %v1902_v32, %v1658_v33 }
 0x6e6   : > { %v1672_v36 = vadd.f32 %v1903_v34, %v1665_v35 }
 0x6e8   : > { %1673 = vst.msk [vmem:[%s551_s23] sm:$0xff] %vm579_vm1, %v1672_v36 }
 0x6e9 PF: > { %s20_s17 = sadd.s32 1, %s2119_s17   ;;  %s2447_s13 = smov %s2111_s15 }
 0x6ea   : > { %p17_p7 = scmp.ge.s32.totalorder %s20_s17, 6   ;;  %s2448_s14 = smov %s2115_s16 }
 0x6eb   : > { %s2449_s15 = smov %s2452_s18  ;;  %s2450_s16 = smov %s2456_s19 }
 0x6ec   :  { %19 = sbr.rel (!%p17_p7) target bundleno = 3 (0x3), region = 117 }

// kernel: lskt_forward.9
= control target key start
LH: loop header
LB: loop body
LE: loop exit
PB: predicated region body
PF: predicated region fallthrough
CT: control target
= control target key end

     0   :  { %v214_v0 = vmov 0.0   ;;  %vm215_vm0 = vmmov 0   ;;  %vm47_vm1 = vcmask 261120   ;;  %vm110_vm2 = vcmask 130048   ;;  %s273_s1 = inlined_call_operand.vmem [shape: bf16[32,16], index: 1, kind: input, shape index: {}]   ;;  %s274_s0 = inlined_call_operand.vmem [shape: f32[16,32], index: 0, kind: input, shape index: {}]   ;;  %s275_s3 = inlined_call_operand.vmem [shape: bf16[16,128], index: 3, kind: input, shape index: {}]   ;;  %s276_s2 = inlined_call_operand.vmem [shape: f32[1,16], index: 2, kind: input, shape index: {}]   ;;  %s277_s4 = inlined_call_operand.vmem [shape: f32[1,128], index: 4, kind: input, shape index: {}]   ;;  %s278_s5 = inlined_call_operand.vmem [shape: f32[16,128], index: 5, kind: output, shape index: {}]  }
   0x1   :  { %187 = vmatprep.subr.bf16.mxu0 %v214_v0  ;;  %v203_v1 = vld [vmem:[%s273_s1 + $0x8] sm:$0xff]   ;;  %191 = vmatprep.mubr.msk.bf16.mxu0 %vm215_vm0, %v214_v0  ;;  %v204_v2 = vld [vmem:[%s273_s1] sm:$0xff]  }
   0x2   :  { %195 = vmatprep.subr.bf16.mxu1 %v214_v0  ;;  %197 = vmatprep.mubr.msk.bf16.mxu1 %vm215_vm0, %v214_v0  ;;  %v21_v3 = vld [vmem:[%s274_s0] sm:$0xff]  ;;  %v22_v4 = vld [vmem:[%s274_s0 + $0x8] sm:$0xff] }
   0x3   :  { %188 = vmatpush3.bf16.msra.mxu0 %v203_v1  ;;  %v27_v5 = vpack.c.bf16 %v22_v4, %v21_v3  ;;  %v205_v6 = vld [vmem:[%s275_s3] sm:$0xff]  }
   0x4   :  { %189 = vmatprep.subr.bf16.mxu0 %v214_v0  ;;  %196 = vmatpush3.bf16.msra.mxu1 %v205_v6  ;;  %v173_v7 = vld [vmem:[%s276_s2] ss:$0 sm:$0xff] }
   0x5   :  { %v177_v17 = vld [vmem:[%s277_s4] ss:$0 sm:$0xff] }
   0x7   :  { %190 = vmatpush3.bf16.msra.mxu0 %v204_v2 }
   0xa   :  { %192 = vmatmul.mubr.msk.bf16.vlgmr.msra.gmra.mxu0 %vm47_vm1, %v27_v5 }
  0xca   :  { %v85_v8 = vpop.f32.mrf.mxu0 }
  0xcb   :  { %v86_v10 = vadd.f32 %v173_v7, %v85_v8 }
  0xcc   :  { %v193_v9 = vpop.f32.mrf.mxu0 }
  0xcd   :  { %v92_v14 = vmax.f32 %v86_v10, 0.0 }
  0xce   :  { %v88_v11 = vpop.f32.mrf.mxu0 }
  0xcf   :  { %v89_v12 = vadd.f32 %v173_v7, %v88_v11 }
  0xd0   :  { %v194_v13 = vpop.f32.mrf.mxu0 }
  0xd1   :  { %v93_v15 = vmax.f32 %v89_v12, 0.0 }
  0xd3   :  { %v96_v16 = vpack.c.bf16 %v93_v15, %v92_v14 }
  0xd5   :  { %198 = vmatmul.mubr.msk.bf16.vlgmr.msra.gmra.mxu1 %vm110_vm2, %v96_v16 }
 0x195   :  { %v148_v18 = vpop.f32.mrf.mxu1 }
 0x196   :  { %v149_v19 = vadd.f32 %v177_v17, %v148_v18 }
 0x197   :  { %v199_v20 = vpop.f32.mrf.mxu1 }
 0x198   :  { %v180_v21 = vmul.f32 -1.442695, %v149_v19 }
 0x199   :  { %v151_v22 = vpop.f32.mrf.mxu1 }
 0x19a   :  { %206 = vpow2.f32 %v180_v21  ;;  %v152_v23 = vadd.f32 %v177_v17, %v151_v22 }
 0x19b   :  { %v200_v24 = vpop.f32.mrf.mxu1 }
 0x19c   :  { %v181_v25 = vmul.f32 -1.442695, %v152_v23 }
 0x19e   :  { %208 = vpow2.f32 %v181_v25 }
 0x1a7   :  { %v207_v26 = vpop.eup %206 }
 0x1a8   :  { %v161_v27 = vadd.f32 1.0, %v207_v26 }
 0x1aa   :  { %210 = vrcp.f32 %v161_v27 }
 0x1ab   :  { %v209_v28 = vpop.eup %208 }
 0x1ac   :  { %v162_v29 = vadd.f32 1.0, %v209_v28 }
 0x1ae   :  { %212 = vrcp.f32 %v162_v29 }
 0x1b7   :  { %v211_v30 = vpop.eup %210 }
 0x1b8   :  { %167 = vst [vmem:[%s278_s5] sm:$0xff] %v211_v30 }
 0x1bb   :  { %v213_v31 = vpop.eup %212 }
 0x1bc   :  { %168 = vst [vmem:[%s278_s5 + $0x8] sm:$0xff] %v213_v31 }

</bundles_post_ra>
